<compile_context>
chip_gen: v5e
topology: v5e:2x2
jax: 0.10.0
libtpu: 0.0.40
codegen_flags: <defaults>
</compile_context>

<pallas_src>
import functools

import jax
import jax.numpy as jnp
from jax import lax
from jax.experimental import pallas as pl
from jax.experimental.pallas import tpu as pltpu


def _round_up(x, m):
    return (x + m - 1) // m * m


# ----------------------------------------------------------------------------------
# Pallas kernel: fused pooler + query proj + memory attention + output proj + fc
# ----------------------------------------------------------------------------------
def _mem_attn_head_kernel(
    cls_ref,      # [TB, Hp]  bf16  [CLS] hidden-state tile
    wp_ref,       # [Hp, Hp]  bf16  pooler weight (in x out)
    bp_ref,       # [1, Hp]   f32   pooler bias
    mem_t_ref,    # [Hp, PK]  bf16  memory^T, real slots at lanes [2C, 2C+M)
    mem_ref,      # [PK, Hp]  bf16  memory,   real slots at rows  [2C, 2C+M)
    wq_ref,       # [Hp, Hp]  bf16  query_proj weight
    bq_ref,       # [1, Hp]   f32   query_proj bias
    wo_ref,       # [Hp, Hp]  bf16  output_proj weight
    bo_ref,       # [1, Hp]   f32   output_proj bias
    wfc_p_ref,    # [Hp, PK]  bf16  fc rows for pooled, cols duplicated at [0,C) and [C,2C)
    wfc_m_ref,    # [Hp, PK]  bf16  fc rows for mem_context, same duplication
    bfc_ref,      # [1, PK]   f32   fc bias, same duplication
    packed_ref,   # [TB, PK]  f32   out: lanes [0,C)=logits | [C,2C)=probs | [2C,2C+M)=mem weights
    *,
    num_classes,
    num_mem_slots,
):
    C = num_classes
    M = num_mem_slots
    NEG = jnp.float32(-1e30)

    # Fused BERT-style pooler stand-in: pooled = tanh(cls @ Wp + bp)   (tanh -> EUP)
    pooled = jnp.tanh(
        jnp.dot(cls_ref[...], wp_ref[...], preferred_element_type=jnp.float32) + bp_ref[...]
    ).astype(jnp.bfloat16)

    # query = query_proj(pooled)
    query = (
        jnp.dot(pooled, wq_ref[...], preferred_element_type=jnp.float32) + bq_ref[...]
    ).astype(jnp.bfloat16)

    # scores = query @ memory^T via the pre-transposed resident operand -> natural MXU layout
    scores = jnp.dot(query, mem_t_ref[...], preferred_element_type=jnp.float32)

    lane = lax.broadcasted_iota(jnp.int32, scores.shape, 1)

    # softmax over the real memory slots only (lanes [2C, 2C+M); padded lanes -> -1e30)
    mem_band = (lane >= 2 * C) & (lane < 2 * C + M)
    s = jnp.where(mem_band, scores, NEG)
    s = s - jnp.max(s, axis=1, keepdims=True)
    e = jnp.exp(s)
    mem_w = e * pl.reciprocal(jnp.sum(e, axis=1, keepdims=True), approx=True)

    # mem_context = mem_w @ memory ; then output_proj
    mem_ctx = jnp.dot(
        mem_w.astype(jnp.bfloat16), mem_ref[...], preferred_element_type=jnp.float32
    )
    mem_ctx = (
        jnp.dot(mem_ctx.astype(jnp.bfloat16), wo_ref[...], preferred_element_type=jnp.float32)
        + bo_ref[...]
    ).astype(jnp.bfloat16)

    # logits = fc(cat([pooled, mem_context])) == pooled@Wfc[:H] + mem_ctx@Wfc[H:] + b
    # (classifier columns are duplicated so an identical logits copy lands in lanes [C, 2C))
    fc_out = (
        jnp.dot(pooled, wfc_p_ref[...], preferred_element_type=jnp.float32)
        + jnp.dot(mem_ctx, wfc_m_ref[...], preferred_element_type=jnp.float32)
        + bfc_ref[...]
    )

    # probabilities = exact softmax over the duplicated logits copy in lanes [C, 2C)
    prob_band = (lane >= C) & (lane < 2 * C)
    lp = jnp.where(prob_band, fc_out, NEG)
    lp = lp - jnp.max(lp, axis=1, keepdims=True)
    ep = jnp.exp(lp)
    probs = ep / jnp.sum(ep, axis=1, keepdims=True)

    # one lane-dense 128-wide store: logits | probs | memory attention weights
    packed_ref[...] = jnp.where(lane < C, fc_out, jnp.where(lane < 2 * C, probs, mem_w))


# ----------------------------------------------------------------------------------
# Wrapper: batch-tiled parallel grid, resident (single-buffered) weights, packed output
# ----------------------------------------------------------------------------------
def mem_attn_head(cls_h, memory, wp, bp, wq, bq, wo, bo, wfc_p, wfc_m, bfc,
                  *, block_b=512):
    B, H = cls_h.shape
    M = memory.shape[0]
    C = wfc_p.shape[-1]

    LANE = 128
    SUB = 16  # bf16 sublane tile height

    H_pad = _round_up(H, LANE)
    # packed output lanes: [0,C) logits | [C,2C) probs | [2C,2C+M) memory weights
    PACK = _round_up(2 * C + M, LANE)

    B_sub = _round_up(B, SUB)
    # >=2 grid steps when the batch allows it (keeps v7x's 2nd TensorCore busy),
    # capped at block_b so tiles stay comfortably inside scoped VMEM.
    TB = min(block_b, max(SUB, _round_up(pl.cdiv(B_sub, 2), SUB)))
    B_pad = _round_up(B_sub, TB)

    bf16, f32 = jnp.bfloat16, jnp.float32

    # --- activations: skip the extra HBM pad pass when already aligned ---
    if B_pad == B and H_pad == H:
        cls_p = cls_h.astype(bf16)
    else:
        cls_p = jnp.zeros((B_pad, H_pad), bf16).at[:B, :H].set(cls_h.astype(bf16))

    # --- tiny resident operands, padded once in the wrapper ---
    def pad2(x, rows, cols, dtype):
        out = jnp.zeros((rows, cols), dtype)
        return out.at[: x.shape[0], : x.shape[1]].set(x.astype(dtype))

    wp_p = pad2(wp, H_pad, H_pad, bf16)
    wq_p = pad2(wq, H_pad, H_pad, bf16)
    wo_p = pad2(wo, H_pad, H_pad, bf16)
    bp_p = pad2(bp.reshape(1, H), 1, H_pad, f32)
    bq_p = pad2(bq.reshape(1, H), 1, H_pad, f32)
    bo_p = pad2(bo.reshape(1, H), 1, H_pad, f32)

    # memory: pre-transposed copy for the scores matmul (natural MXU layout); real slots
    # are parked at lanes/rows [2C, 2C+M) so the attention weights land in the packed band.
    mem_t_p = jnp.zeros((H_pad, PACK), bf16).at[:H, 2 * C: 2 * C + M].set(memory.T.astype(bf16))
    mem_p = jnp.zeros((PACK, H_pad), bf16).at[2 * C: 2 * C + M, :H].set(memory.astype(bf16))

    # classifier columns duplicated into lanes [0,C) (logits) and [C,2C) (softmax copy)
    wfc_p_bf = wfc_p.astype(bf16)
    wfc_m_bf = wfc_m.astype(bf16)
    wfc_p_p = jnp.zeros((H_pad, PACK), bf16).at[:H, :C].set(wfc_p_bf).at[:H, C:2 * C].set(wfc_p_bf)
    wfc_m_p = jnp.zeros((H_pad, PACK), bf16).at[:H, :C].set(wfc_m_bf).at[:H, C:2 * C].set(wfc_m_bf)
    bfc_f = bfc.reshape(1, C).astype(f32)
    bfc_p = jnp.zeros((1, PACK), f32).at[:, :C].set(bfc_f).at[:, C:2 * C].set(bfc_f)

    grid = (B_pad // TB,)

    def batched(shape):
        return pl.BlockSpec(shape, lambda i: (i, 0))

    kernel = functools.partial(_mem_attn_head_kernel, num_classes=C, num_mem_slots=M)

    def run(single_buffer_residents):
        if single_buffer_residents:
            # blocks whose index never changes need only one VMEM buffer
            def resident(shape):
                return pl.BlockSpec(shape, lambda i: (0, 0), pipeline_mode=pl.Buffered(1))
        else:
            def resident(shape):
                return pl.BlockSpec(shape, lambda i: (0, 0))

        return pl.pallas_call(
            kernel,
            grid=grid,
            out_shape=jax.ShapeDtypeStruct((B_pad, PACK), f32),
            in_specs=[
                batched((TB, H_pad)),        # cls hidden-state tile
                resident((H_pad, H_pad)),    # wp
                resident((1, H_pad)),        # bp
                resident((H_pad, PACK)),     # memory^T
                resident((PACK, H_pad)),     # memory
                resident((H_pad, H_pad)),    # wq
                resident((1, H_pad)),        # bq
                resident((H_pad, H_pad)),    # wo
                resident((1, H_pad)),        # bo
                resident((H_pad, PACK)),     # wfc (pooled half)
                resident((H_pad, PACK)),     # wfc (mem_context half)
                resident((1, PACK)),         # bfc
            ],
            out_specs=batched((TB, PACK)),
            compiler_params=pltpu.CompilerParams(
                dimension_semantics=("parallel",),      # shard batch tiles across TCs (v7x)
                vmem_limit_bytes=64 * 1024 * 1024,      # clear v5e's 16 MiB scoped default
            ),
        )(cls_p, wp_p, bp_p, mem_t_p, mem_p, wq_p, bq_p, wo_p, bo_p,
          wfc_p_p, wfc_m_p, bfc_p)

    try:
        packed = run(True)
    except Exception:
        # TODO(synk): pipeline_mode=pl.Buffered(1) unsupported on this JAX build; fall back
        # to default double-buffered resident blocks (correctness identical).
        packed = run(False)

    logits = packed[:B, :C]
    probs = packed[:B, C:2 * C]
    mem_w = packed[:B, 2 * C: 2 * C + M]
    return logits, probs, mem_w


# ----------------------------------------------------------------------------------
# Deterministic parameter init + BERT stand-in (plain JAX glue)
# ----------------------------------------------------------------------------------
# TODO(synk): BertModel.from_pretrained cannot be reproduced; replaced by a deterministic
#             embedding lookup; the [CLS] tanh pooler is fused into the Pallas kernel.
def make_params(key, vocab_size, hidden_size, mem_slots, num_classes):
    ks = jax.random.split(key, 8)
    scale = 0.02
    return {
        "emb":    jax.random.normal(ks[0], (vocab_size, hidden_size), jnp.float32) * scale,
        "wp":     jax.random.normal(ks[1], (hidden_size, hidden_size), jnp.float32) * scale,
        "bp":     jnp.zeros((1, hidden_size), jnp.float32),
        "memory": jax.random.normal(ks[2], (mem_slots, hidden_size), jnp.float32),
        "wq":     jax.random.normal(ks[3], (hidden_size, hidden_size), jnp.float32) * scale,
        "bq":     jnp.zeros((1, hidden_size), jnp.float32),
        "wo":     jax.random.normal(ks[4], (hidden_size, hidden_size), jnp.float32) * scale,
        "bo":     jnp.zeros((1, hidden_size), jnp.float32),
        # fc: Linear(2H -> C); stored pre-split & pre-transposed as two [H, C] blocks
        "wfc_p":  jax.random.normal(ks[5], (hidden_size, num_classes), jnp.float32) * scale,
        "wfc_m":  jax.random.normal(ks[6], (hidden_size, num_classes), jnp.float32) * scale,
        "bfc":    jnp.zeros((1, num_classes), jnp.float32),
    }


def model_forward(params, x):
    context = x[0]
    # mask = x[2]  # stand-in encoder ignores the attention mask
    hidden = params["emb"][context]        # [B, S, H]  last_hidden_state stand-in (gather)
    cls = hidden[:, 0, :]                  # [B, H]     [CLS] token
    logits, probs, mem_attn = mem_attn_head(
        cls, params["memory"],
        params["wp"], params["bp"],
        params["wq"], params["bq"],
        params["wo"], params["bo"],
        params["wfc_p"], params["wfc_m"], params["bfc"],
    )
    return logits, probs, mem_attn


def reference_forward(params, x):
    """Pure-JAX f32 reference mirroring the PyTorch forward."""
    context = x[0]
    hidden = params["emb"][context]
    cls = hidden[:, 0, :]
    pooled = jnp.tanh(cls @ params["wp"] + params["bp"])
    query = pooled @ params["wq"] + params["bq"]
    scores = query @ params["memory"].T
    mem_w = jax.nn.softmax(scores, axis=1)
    mem_ctx = mem_w @ params["memory"]
    mem_ctx = mem_ctx @ params["wo"] + params["bo"]
    logits = pooled @ params["wfc_p"] + mem_ctx @ params["wfc_m"] + params["bfc"]
    probs = jax.nn.softmax(logits, axis=1)
    return logits, probs, mem_w


# ----------------------------------------------------------------------------------
if __name__ == "__main__":
    B, S = 2, 8
    HIDDEN = 32
    MEM_SLOTS = 20
    NUM_CLASSES = 4
    VOCAB = 30

    key = jax.random.PRNGKey(0)
    kp, kc = jax.random.split(key, 2)

    params = make_params(kp, VOCAB, HIDDEN, MEM_SLOTS, NUM_CLASSES)

    context = jax.random.randint(kc, (B, S), 0, VOCAB, dtype=jnp.int32)
    seq_len_marker = jnp.full((B,), S, dtype=jnp.int32)   # x[1] placeholder
    mask = jnp.ones((B, S), dtype=jnp.int32)              # x[2] attention mask
    x = (context, seq_len_marker, mask)

    logits, probs, mem_attn = model_forward(params, x)
    jax.block_until_ready((logits, probs, mem_attn))

    # shape + sanity checks against a pure-JAX f32 reference (bf16 MXU tolerance)
    ref_logits, ref_probs, ref_mem = reference_forward(params, x)
    assert logits.shape == (B, NUM_CLASSES)
    assert probs.shape == (B, NUM_CLASSES)
    assert mem_attn.shape == (B, MEM_SLOTS)
    assert bool(jnp.all(jnp.isfinite(logits)))
    assert bool(jnp.allclose(logits, ref_logits, atol=5e-2))
    assert bool(jnp.allclose(probs, ref_probs, atol=5e-2))
    assert bool(jnp.allclose(mem_attn, ref_mem, atol=5e-2))
    print("KERNEL_OK")
</pallas_src>

<mosaic_0001>
module attributes {stable_mosaic.version = 11 : i64} {
  func.func @_mem_attn_head_kernel(%arg0: i32, %arg1: memref<16x128xbf16, #tpu.memory_space<vmem>>, %arg2: memref<128x128xbf16, #tpu.memory_space<vmem>>, %arg3: memref<1x128xf32, #tpu.memory_space<vmem>>, %arg4: memref<128x128xbf16, #tpu.memory_space<vmem>>, %arg5: memref<128x128xbf16, #tpu.memory_space<vmem>>, %arg6: memref<128x128xbf16, #tpu.memory_space<vmem>>, %arg7: memref<1x128xf32, #tpu.memory_space<vmem>>, %arg8: memref<128x128xbf16, #tpu.memory_space<vmem>>, %arg9: memref<1x128xf32, #tpu.memory_space<vmem>>, %arg10: memref<128x128xbf16, #tpu.memory_space<vmem>>, %arg11: memref<128x128xbf16, #tpu.memory_space<vmem>>, %arg12: memref<1x128xf32, #tpu.memory_space<vmem>>, %arg13: memref<16x128xf32, #tpu.memory_space<vmem>>) attributes {dimension_semantics = [#tpu.dimension_semantics<parallel>], iteration_bounds = array<i64: 1>, scalar_prefetch = 0 : i64, scratch_operands = 0 : i64, tpu.core_type = #tpu.core_type<tc>, window_params = [{transform_indices = @transform_0, window_bounds = array<i64: 16, 128>}, {pipeline_mode = #tpu.pipeline_mode<synchronous>, transform_indices = @transform_1, window_bounds = array<i64: 128, 128>}, {pipeline_mode = #tpu.pipeline_mode<synchronous>, transform_indices = @transform_2, window_bounds = array<i64: 1, 128>}, {pipeline_mode = #tpu.pipeline_mode<synchronous>, transform_indices = @transform_3, window_bounds = array<i64: 128, 128>}, {pipeline_mode = #tpu.pipeline_mode<synchronous>, transform_indices = @transform_4, window_bounds = array<i64: 128, 128>}, {pipeline_mode = #tpu.pipeline_mode<synchronous>, transform_indices = @transform_5, window_bounds = array<i64: 128, 128>}, {pipeline_mode = #tpu.pipeline_mode<synchronous>, transform_indices = @transform_6, window_bounds = array<i64: 1, 128>}, {pipeline_mode = #tpu.pipeline_mode<synchronous>, transform_indices = @transform_7, window_bounds = array<i64: 128, 128>}, {pipeline_mode = #tpu.pipeline_mode<synchronous>, transform_indices = @transform_8, window_bounds = array<i64: 1, 128>}, {pipeline_mode = #tpu.pipeline_mode<synchronous>, transform_indices = @transform_9, window_bounds = array<i64: 128, 128>}, {pipeline_mode = #tpu.pipeline_mode<synchronous>, transform_indices = @transform_10, window_bounds = array<i64: 128, 128>}, {pipeline_mode = #tpu.pipeline_mode<synchronous>, transform_indices = @transform_11, window_bounds = array<i64: 1, 128>}, {transform_indices = @transform_12, window_bounds = array<i64: 16, 128>}]} {
    %c0 = arith.constant 0 : index
    %c0_0 = arith.constant 0 : index
    %0 = vector.load %arg1[%c0, %c0_0] : memref<16x128xbf16, #tpu.memory_space<vmem>>, vector<16x128xbf16>
    %c0_1 = arith.constant 0 : index
    %c0_2 = arith.constant 0 : index
    %1 = vector.load %arg2[%c0_1, %c0_2] : memref<128x128xbf16, #tpu.memory_space<vmem>>, vector<128x128xbf16>
    %cst = arith.constant dense<0.000000e+00> : vector<16x128xf32>
    %2 = tpu.matmul %0, %1, %cst {dimension_numbers = #tpu.dot_dimension_numbers<[1], [0], [0], [1], [0, 0, 1, 1], [], []>} : vector<16x128xbf16>, vector<128x128xbf16>, vector<16x128xf32> -> vector<16x128xf32>
    %c0_3 = arith.constant 0 : index
    %c0_4 = arith.constant 0 : index
    %3 = vector.load %arg3[%c0_3, %c0_4] : memref<1x128xf32, #tpu.memory_space<vmem>>, vector<1x128xf32>
    %4 = vector.broadcast %3 : vector<1x128xf32> to vector<16x128xf32>
    %5 = arith.addf %2, %4 : vector<16x128xf32>
    %6 = math.tanh %5 : vector<16x128xf32>
    %7 = arith.truncf %6 : vector<16x128xf32> to vector<16x128xbf16>
    %c0_5 = arith.constant 0 : index
    %c0_6 = arith.constant 0 : index
    %8 = vector.load %arg6[%c0_5, %c0_6] : memref<128x128xbf16, #tpu.memory_space<vmem>>, vector<128x128xbf16>
    %cst_7 = arith.constant dense<0.000000e+00> : vector<16x128xf32>
    %9 = tpu.matmul %7, %8, %cst_7 {dimension_numbers = #tpu.dot_dimension_numbers<[1], [0], [0], [1], [0, 0, 1, 1], [], []>} : vector<16x128xbf16>, vector<128x128xbf16>, vector<16x128xf32> -> vector<16x128xf32>
    %c0_8 = arith.constant 0 : index
    %c0_9 = arith.constant 0 : index
    %10 = vector.load %arg7[%c0_8, %c0_9] : memref<1x128xf32, #tpu.memory_space<vmem>>, vector<1x128xf32>
    %11 = vector.broadcast %10 : vector<1x128xf32> to vector<16x128xf32>
    %12 = arith.addf %9, %11 : vector<16x128xf32>
    %13 = arith.truncf %12 : vector<16x128xf32> to vector<16x128xbf16>
    %c0_10 = arith.constant 0 : index
    %c0_11 = arith.constant 0 : index
    %14 = vector.load %arg4[%c0_10, %c0_11] : memref<128x128xbf16, #tpu.memory_space<vmem>>, vector<128x128xbf16>
    %cst_12 = arith.constant dense<0.000000e+00> : vector<16x128xf32>
    %15 = tpu.matmul %13, %14, %cst_12 {dimension_numbers = #tpu.dot_dimension_numbers<[1], [0], [0], [1], [0, 0, 1, 1], [], []>} : vector<16x128xbf16>, vector<128x128xbf16>, vector<16x128xf32> -> vector<16x128xf32>
    %16 = tpu.iota {dimensions = array<i32: 1>} : vector<16x128xi32>
    %c8_i32 = arith.constant 8 : i32
    %17 = vector.broadcast %c8_i32 : i32 to vector<16x128xi32>
    %18 = arith.cmpi sge, %16, %17 : vector<16x128xi32>
    %c28_i32 = arith.constant 28 : i32
    %19 = vector.broadcast %c28_i32 : i32 to vector<16x128xi32>
    %20 = arith.cmpi slt, %16, %19 : vector<16x128xi32>
    %21 = arith.andi %18, %20 : vector<16x128xi1>
    %cst_13 = arith.constant -1.000000e+30 : f32
    %22 = vector.broadcast %cst_13 : f32 to vector<16x128xf32>
    %23 = arith.select %21, %15, %22 : vector<16x128xi1>, vector<16x128xf32>
    %cst_14 = arith.constant dense<0xFF800000> : vector<16xf32>
    %24 = vector.multi_reduction <maximumf>, %23, %cst_14 [1] : vector<16x128xf32> to vector<16xf32>
    %25 = vector.shape_cast %24 : vector<16xf32> to vector<16x1xf32>
    %26 = vector.broadcast %25 : vector<16x1xf32> to vector<16x128xf32>
    %27 = arith.subf %23, %26 : vector<16x128xf32>
    %28 = math.exp %27 : vector<16x128xf32>
    %cst_15 = arith.constant dense<0.000000e+00> : vector<16xf32>
    %29 = vector.multi_reduction <add>, %28, %cst_15 [1] : vector<16x128xf32> to vector<16xf32>
    %30 = vector.shape_cast %29 : vector<16xf32> to vector<16x1xf32>
    %31 = tpu.reciprocal %30 {approx = true} : vector<16x1xf32> -> vector<16x1xf32>
    %32 = vector.broadcast %31 : vector<16x1xf32> to vector<16x128xf32>
    %33 = arith.mulf %28, %32 : vector<16x128xf32>
    %34 = arith.truncf %33 : vector<16x128xf32> to vector<16x128xbf16>
    %c0_16 = arith.constant 0 : index
    %c0_17 = arith.constant 0 : index
    %35 = vector.load %arg5[%c0_16, %c0_17] : memref<128x128xbf16, #tpu.memory_space<vmem>>, vector<128x128xbf16>
    %cst_18 = arith.constant dense<0.000000e+00> : vector<16x128xf32>
    %36 = tpu.matmul %34, %35, %cst_18 {dimension_numbers = #tpu.dot_dimension_numbers<[1], [0], [0], [1], [0, 0, 1, 1], [], []>} : vector<16x128xbf16>, vector<128x128xbf16>, vector<16x128xf32> -> vector<16x128xf32>
    %37 = arith.truncf %36 : vector<16x128xf32> to vector<16x128xbf16>
    %c0_19 = arith.constant 0 : index
    %c0_20 = arith.constant 0 : index
    %38 = vector.load %arg8[%c0_19, %c0_20] : memref<128x128xbf16, #tpu.memory_space<vmem>>, vector<128x128xbf16>
    %cst_21 = arith.constant dense<0.000000e+00> : vector<16x128xf32>
    %39 = tpu.matmul %37, %38, %cst_21 {dimension_numbers = #tpu.dot_dimension_numbers<[1], [0], [0], [1], [0, 0, 1, 1], [], []>} : vector<16x128xbf16>, vector<128x128xbf16>, vector<16x128xf32> -> vector<16x128xf32>
    %c0_22 = arith.constant 0 : index
    %c0_23 = arith.constant 0 : index
    %40 = vector.load %arg9[%c0_22, %c0_23] : memref<1x128xf32, #tpu.memory_space<vmem>>, vector<1x128xf32>
    %41 = vector.broadcast %40 : vector<1x128xf32> to vector<16x128xf32>
    %42 = arith.addf %39, %41 : vector<16x128xf32>
    %43 = arith.truncf %42 : vector<16x128xf32> to vector<16x128xbf16>
    %c0_24 = arith.constant 0 : index
    %c0_25 = arith.constant 0 : index
    %44 = vector.load %arg10[%c0_24, %c0_25] : memref<128x128xbf16, #tpu.memory_space<vmem>>, vector<128x128xbf16>
    %cst_26 = arith.constant dense<0.000000e+00> : vector<16x128xf32>
    %45 = tpu.matmul %7, %44, %cst_26 {dimension_numbers = #tpu.dot_dimension_numbers<[1], [0], [0], [1], [0, 0, 1, 1], [], []>} : vector<16x128xbf16>, vector<128x128xbf16>, vector<16x128xf32> -> vector<16x128xf32>
    %c0_27 = arith.constant 0 : index
    %c0_28 = arith.constant 0 : index
    %46 = vector.load %arg11[%c0_27, %c0_28] : memref<128x128xbf16, #tpu.memory_space<vmem>>, vector<128x128xbf16>
    %cst_29 = arith.constant dense<0.000000e+00> : vector<16x128xf32>
    %47 = tpu.matmul %43, %46, %cst_29 {dimension_numbers = #tpu.dot_dimension_numbers<[1], [0], [0], [1], [0, 0, 1, 1], [], []>} : vector<16x128xbf16>, vector<128x128xbf16>, vector<16x128xf32> -> vector<16x128xf32>
    %48 = arith.addf %45, %47 : vector<16x128xf32>
    %c0_30 = arith.constant 0 : index
    %c0_31 = arith.constant 0 : index
    %49 = vector.load %arg12[%c0_30, %c0_31] : memref<1x128xf32, #tpu.memory_space<vmem>>, vector<1x128xf32>
    %50 = vector.broadcast %49 : vector<1x128xf32> to vector<16x128xf32>
    %51 = arith.addf %48, %50 : vector<16x128xf32>
    %c4_i32 = arith.constant 4 : i32
    %52 = vector.broadcast %c4_i32 : i32 to vector<16x128xi32>
    %53 = arith.cmpi sge, %16, %52 : vector<16x128xi32>
    %c8_i32_32 = arith.constant 8 : i32
    %54 = vector.broadcast %c8_i32_32 : i32 to vector<16x128xi32>
    %55 = arith.cmpi slt, %16, %54 : vector<16x128xi32>
    %56 = arith.andi %53, %55 : vector<16x128xi1>
    %cst_33 = arith.constant -1.000000e+30 : f32
    %57 = vector.broadcast %cst_33 : f32 to vector<16x128xf32>
    %58 = arith.select %56, %51, %57 : vector<16x128xi1>, vector<16x128xf32>
    %cst_34 = arith.constant dense<0xFF800000> : vector<16xf32>
    %59 = vector.multi_reduction <maximumf>, %58, %cst_34 [1] : vector<16x128xf32> to vector<16xf32>
    %60 = vector.shape_cast %59 : vector<16xf32> to vector<16x1xf32>
    %61 = vector.broadcast %60 : vector<16x1xf32> to vector<16x128xf32>
    %62 = arith.subf %58, %61 : vector<16x128xf32>
    %63 = math.exp %62 : vector<16x128xf32>
    %cst_35 = arith.constant dense<0.000000e+00> : vector<16xf32>
    %64 = vector.multi_reduction <add>, %63, %cst_35 [1] : vector<16x128xf32> to vector<16xf32>
    %65 = vector.shape_cast %64 : vector<16xf32> to vector<16x1xf32>
    %66 = vector.broadcast %65 : vector<16x1xf32> to vector<16x128xf32>
    %67 = arith.divf %63, %66 : vector<16x128xf32>
    %c4_i32_36 = arith.constant 4 : i32
    %68 = vector.broadcast %c4_i32_36 : i32 to vector<16x128xi32>
    %69 = arith.cmpi slt, %16, %68 : vector<16x128xi32>
    %c8_i32_37 = arith.constant 8 : i32
    %70 = vector.broadcast %c8_i32_37 : i32 to vector<16x128xi32>
    %71 = arith.cmpi slt, %16, %70 : vector<16x128xi32>
    %72 = arith.select %71, %67, %33 : vector<16x128xi1>, vector<16x128xf32>
    %73 = arith.select %69, %51, %72 : vector<16x128xi1>, vector<16x128xf32>
    %c0_38 = arith.constant 0 : index
    %c0_39 = arith.constant 0 : index
    %74 = vector.load %arg13[%c0_38, %c0_39] : memref<16x128xf32, #tpu.memory_space<vmem>>, vector<16x128xf32>
    tpu.vector_store %arg13[%c0_38, %c0_39], %73 {strides = array<i32>} : memref<16x128xf32, #tpu.memory_space<vmem>>, vector<16x128xf32>,
    return
  }
  func.func @transform_0(%arg0: i32) -> (i32, i32) {
    %c0_i32 = arith.constant 0 : i32
    %c0_i32_0 = arith.constant 0 : i32
    return %arg0, %c0_i32 : i32, i32
  }
  func.func @transform_1(%arg0: i32) -> (i32, i32) {
    %c0_i32 = arith.constant 0 : i32
    %c0_i32_0 = arith.constant 0 : i32
    %c0_i32_1 = arith.constant 0 : i32
    return %c0_i32, %c0_i32_0 : i32, i32
  }
  func.func @transform_2(%arg0: i32) -> (i32, i32) {
    %c0_i32 = arith.constant 0 : i32
    %c0_i32_0 = arith.constant 0 : i32
    %c0_i32_1 = arith.constant 0 : i32
    return %c0_i32, %c0_i32_0 : i32, i32
  }
  func.func @transform_3(%arg0: i32) -> (i32, i32) {
    %c0_i32 = arith.constant 0 : i32
    %c0_i32_0 = arith.constant 0 : i32
    %c0_i32_1 = arith.constant 0 : i32
    return %c0_i32, %c0_i32_0 : i32, i32
  }
  func.func @transform_4(%arg0: i32) -> (i32, i32) {
    %c0_i32 = arith.constant 0 : i32
    %c0_i32_0 = arith.constant 0 : i32
    %c0_i32_1 = arith.constant 0 : i32
    return %c0_i32, %c0_i32_0 : i32, i32
  }
  func.func @transform_5(%arg0: i32) -> (i32, i32) {
    %c0_i32 = arith.constant 0 : i32
    %c0_i32_0 = arith.constant 0 : i32
    %c0_i32_1 = arith.constant 0 : i32
    return %c0_i32, %c0_i32_0 : i32, i32
  }
  func.func @transform_6(%arg0: i32) -> (i32, i32) {
    %c0_i32 = arith.constant 0 : i32
    %c0_i32_0 = arith.constant 0 : i32
    %c0_i32_1 = arith.constant 0 : i32
    return %c0_i32, %c0_i32_0 : i32, i32
  }
  func.func @transform_7(%arg0: i32) -> (i32, i32) {
    %c0_i32 = arith.constant 0 : i32
    %c0_i32_0 = arith.constant 0 : i32
    %c0_i32_1 = arith.constant 0 : i32
    return %c0_i32, %c0_i32_0 : i32, i32
  }
  func.func @transform_8(%arg0: i32) -> (i32, i32) {
    %c0_i32 = arith.constant 0 : i32
    %c0_i32_0 = arith.constant 0 : i32
    %c0_i32_1 = arith.constant 0 : i32
    return %c0_i32, %c0_i32_0 : i32, i32
  }
  func.func @transform_9(%arg0: i32) -> (i32, i32) {
    %c0_i32 = arith.constant 0 : i32
    %c0_i32_0 = arith.constant 0 : i32
    %c0_i32_1 = arith.constant 0 : i32
    return %c0_i32, %c0_i32_0 : i32, i32
  }
  func.func @transform_10(%arg0: i32) -> (i32, i32) {
    %c0_i32 = arith.constant 0 : i32
    %c0_i32_0 = arith.constant 0 : i32
    %c0_i32_1 = arith.constant 0 : i32
    return %c0_i32, %c0_i32_0 : i32, i32
  }
  func.func @transform_11(%arg0: i32) -> (i32, i32) {
    %c0_i32 = arith.constant 0 : i32
    %c0_i32_0 = arith.constant 0 : i32
    %c0_i32_1 = arith.constant 0 : i32
    return %c0_i32, %c0_i32_0 : i32, i32
  }
  func.func @transform_12(%arg0: i32) -> (i32, i32) {
    %c0_i32 = arith.constant 0 : i32
    %c0_i32_0 = arith.constant 0 : i32
    return %arg0, %c0_i32 : i32, i32
  }
}

module attributes {stable_mosaic.version = 11 : i64} {
  func.func @_mem_attn_head_kernel(%arg0: i32, %arg1: memref<16x128xbf16, #tpu.memory_space<vmem>>, %arg2: memref<128x128xbf16, #tpu.memory_space<vmem>>, %arg3: memref<1x128xf32, #tpu.memory_space<vmem>>, %arg4: memref<128x128xbf16, #tpu.memory_space<vmem>>, %arg5: memref<128x128xbf16, #tpu.memory_space<vmem>>, %arg6: memref<128x128xbf16, #tpu.memory_space<vmem>>, %arg7: memref<1x128xf32, #tpu.memory_space<vmem>>, %arg8: memref<128x128xbf16, #tpu.memory_space<vmem>>, %arg9: memref<1x128xf32, #tpu.memory_space<vmem>>, %arg10: memref<128x128xbf16, #tpu.memory_space<vmem>>, %arg11: memref<128x128xbf16, #tpu.memory_space<vmem>>, %arg12: memref<1x128xf32, #tpu.memory_space<vmem>>, %arg13: memref<16x128xf32, #tpu.memory_space<vmem>>) attributes {dimension_semantics = [#tpu.dimension_semantics<parallel>], iteration_bounds = array<i64: 1>, scalar_prefetch = 0 : i64, scratch_operands = 0 : i64, tpu.core_type = #tpu.core_type<tc>, window_params = [{transform_indices = @transform_0, window_bounds = array<i64: 16, 128>}, {pipeline_mode = #tpu.pipeline_mode<synchronous>, transform_indices = @transform_1, window_bounds = array<i64: 128, 128>}, {pipeline_mode = #tpu.pipeline_mode<synchronous>, transform_indices = @transform_2, window_bounds = array<i64: 1, 128>}, {pipeline_mode = #tpu.pipeline_mode<synchronous>, transform_indices = @transform_3, window_bounds = array<i64: 128, 128>}, {pipeline_mode = #tpu.pipeline_mode<synchronous>, transform_indices = @transform_4, window_bounds = array<i64: 128, 128>}, {pipeline_mode = #tpu.pipeline_mode<synchronous>, transform_indices = @transform_5, window_bounds = array<i64: 128, 128>}, {pipeline_mode = #tpu.pipeline_mode<synchronous>, transform_indices = @transform_6, window_bounds = array<i64: 1, 128>}, {pipeline_mode = #tpu.pipeline_mode<synchronous>, transform_indices = @transform_7, window_bounds = array<i64: 128, 128>}, {pipeline_mode = #tpu.pipeline_mode<synchronous>, transform_indices = @transform_8, window_bounds = array<i64: 1, 128>}, {pipeline_mode = #tpu.pipeline_mode<synchronous>, transform_indices = @transform_9, window_bounds = array<i64: 128, 128>}, {pipeline_mode = #tpu.pipeline_mode<synchronous>, transform_indices = @transform_10, window_bounds = array<i64: 128, 128>}, {pipeline_mode = #tpu.pipeline_mode<synchronous>, transform_indices = @transform_11, window_bounds = array<i64: 1, 128>}, {transform_indices = @transform_12, window_bounds = array<i64: 16, 128>}]} {
    %c0 = arith.constant 0 : index
    %c0_0 = arith.constant 0 : index
    %0 = vector.load %arg1[%c0, %c0_0] : memref<16x128xbf16, #tpu.memory_space<vmem>>, vector<16x128xbf16>
    %c0_1 = arith.constant 0 : index
    %c0_2 = arith.constant 0 : index
    %1 = vector.load %arg2[%c0_1, %c0_2] : memref<128x128xbf16, #tpu.memory_space<vmem>>, vector<128x128xbf16>
    %cst = arith.constant dense<0.000000e+00> : vector<16x128xf32>
    %2 = tpu.matmul %0, %1, %cst {dimension_numbers = #tpu.dot_dimension_numbers<[1], [0], [0], [1], [0, 0, 1, 1], [], []>} : vector<16x128xbf16>, vector<128x128xbf16>, vector<16x128xf32> -> vector<16x128xf32>
    %c0_3 = arith.constant 0 : index
    %c0_4 = arith.constant 0 : index
    %3 = vector.load %arg3[%c0_3, %c0_4] : memref<1x128xf32, #tpu.memory_space<vmem>>, vector<1x128xf32>
    %4 = vector.broadcast %3 : vector<1x128xf32> to vector<16x128xf32>
    %5 = arith.addf %2, %4 : vector<16x128xf32>
    %6 = math.tanh %5 : vector<16x128xf32>
    %7 = arith.truncf %6 : vector<16x128xf32> to vector<16x128xbf16>
    %c0_5 = arith.constant 0 : index
    %c0_6 = arith.constant 0 : index
    %8 = vector.load %arg6[%c0_5, %c0_6] : memref<128x128xbf16, #tpu.memory_space<vmem>>, vector<128x128xbf16>
    %cst_7 = arith.constant dense<0.000000e+00> : vector<16x128xf32>
    %9 = tpu.matmul %7, %8, %cst_7 {dimension_numbers = #tpu.dot_dimension_numbers<[1], [0], [0], [1], [0, 0, 1, 1], [], []>} : vector<16x128xbf16>, vector<128x128xbf16>, vector<16x128xf32> -> vector<16x128xf32>
    %c0_8 = arith.constant 0 : index
    %c0_9 = arith.constant 0 : index
    %10 = vector.load %arg7[%c0_8, %c0_9] : memref<1x128xf32, #tpu.memory_space<vmem>>, vector<1x128xf32>
    %11 = vector.broadcast %10 : vector<1x128xf32> to vector<16x128xf32>
    %12 = arith.addf %9, %11 : vector<16x128xf32>
    %13 = arith.truncf %12 : vector<16x128xf32> to vector<16x128xbf16>
    %c0_10 = arith.constant 0 : index
    %c0_11 = arith.constant 0 : index
    %14 = vector.load %arg4[%c0_10, %c0_11] : memref<128x128xbf16, #tpu.memory_space<vmem>>, vector<128x128xbf16>
    %cst_12 = arith.constant dense<0.000000e+00> : vector<16x128xf32>
    %15 = tpu.matmul %13, %14, %cst_12 {dimension_numbers = #tpu.dot_dimension_numbers<[1], [0], [0], [1], [0, 0, 1, 1], [], []>} : vector<16x128xbf16>, vector<128x128xbf16>, vector<16x128xf32> -> vector<16x128xf32>
    %16 = tpu.iota {dimensions = array<i32: 1>} : vector<16x128xi32>
    %c8_i32 = arith.constant 8 : i32
    %17 = vector.broadcast %c8_i32 : i32 to vector<16x128xi32>
    %18 = arith.cmpi sge, %16, %17 : vector<16x128xi32>
    %c28_i32 = arith.constant 28 : i32
    %19 = vector.broadcast %c28_i32 : i32 to vector<16x128xi32>
    %20 = arith.cmpi slt, %16, %19 : vector<16x128xi32>
    %21 = arith.andi %18, %20 : vector<16x128xi1>
    %cst_13 = arith.constant -1.000000e+30 : f32
    %22 = vector.broadcast %cst_13 : f32 to vector<16x128xf32>
    %23 = arith.select %21, %15, %22 : vector<16x128xi1>, vector<16x128xf32>
    %cst_14 = arith.constant dense<0xFF800000> : vector<16xf32>
    %24 = vector.multi_reduction <maximumf>, %23, %cst_14 [1] : vector<16x128xf32> to vector<16xf32>
    %25 = vector.shape_cast %24 : vector<16xf32> to vector<16x1xf32>
    %26 = vector.broadcast %25 : vector<16x1xf32> to vector<16x128xf32>
    %27 = arith.subf %23, %26 : vector<16x128xf32>
    %28 = math.exp %27 : vector<16x128xf32>
    %cst_15 = arith.constant dense<0.000000e+00> : vector<16xf32>
    %29 = vector.multi_reduction <add>, %28, %cst_15 [1] : vector<16x128xf32> to vector<16xf32>
    %30 = vector.shape_cast %29 : vector<16xf32> to vector<16x1xf32>
    %31 = tpu.reciprocal %30 {approx = true} : vector<16x1xf32> -> vector<16x1xf32>
    %32 = vector.broadcast %31 : vector<16x1xf32> to vector<16x128xf32>
    %33 = arith.mulf %28, %32 : vector<16x128xf32>
    %34 = arith.truncf %33 : vector<16x128xf32> to vector<16x128xbf16>
    %c0_16 = arith.constant 0 : index
    %c0_17 = arith.constant 0 : index
    %35 = vector.load %arg5[%c0_16, %c0_17] : memref<128x128xbf16, #tpu.memory_space<vmem>>, vector<128x128xbf16>
    %cst_18 = arith.constant dense<0.000000e+00> : vector<16x128xf32>
    %36 = tpu.matmul %34, %35, %cst_18 {dimension_numbers = #tpu.dot_dimension_numbers<[1], [0], [0], [1], [0, 0, 1, 1], [], []>} : vector<16x128xbf16>, vector<128x128xbf16>, vector<16x128xf32> -> vector<16x128xf32>
    %37 = arith.truncf %36 : vector<16x128xf32> to vector<16x128xbf16>
    %c0_19 = arith.constant 0 : index
    %c0_20 = arith.constant 0 : index
    %38 = vector.load %arg8[%c0_19, %c0_20] : memref<128x128xbf16, #tpu.memory_space<vmem>>, vector<128x128xbf16>
    %cst_21 = arith.constant dense<0.000000e+00> : vector<16x128xf32>
    %39 = tpu.matmul %37, %38, %cst_21 {dimension_numbers = #tpu.dot_dimension_numbers<[1], [0], [0], [1], [0, 0, 1, 1], [], []>} : vector<16x128xbf16>, vector<128x128xbf16>, vector<16x128xf32> -> vector<16x128xf32>
    %c0_22 = arith.constant 0 : index
    %c0_23 = arith.constant 0 : index
    %40 = vector.load %arg9[%c0_22, %c0_23] : memref<1x128xf32, #tpu.memory_space<vmem>>, vector<1x128xf32>
    %41 = vector.broadcast %40 : vector<1x128xf32> to vector<16x128xf32>
    %42 = arith.addf %39, %41 : vector<16x128xf32>
    %43 = arith.truncf %42 : vector<16x128xf32> to vector<16x128xbf16>
    %c0_24 = arith.constant 0 : index
    %c0_25 = arith.constant 0 : index
    %44 = vector.load %arg10[%c0_24, %c0_25] : memref<128x128xbf16, #tpu.memory_space<vmem>>, vector<128x128xbf16>
    %cst_26 = arith.constant dense<0.000000e+00> : vector<16x128xf32>
    %45 = tpu.matmul %7, %44, %cst_26 {dimension_numbers = #tpu.dot_dimension_numbers<[1], [0], [0], [1], [0, 0, 1, 1], [], []>} : vector<16x128xbf16>, vector<128x128xbf16>, vector<16x128xf32> -> vector<16x128xf32>
    %c0_27 = arith.constant 0 : index
    %c0_28 = arith.constant 0 : index
    %46 = vector.load %arg11[%c0_27, %c0_28] : memref<128x128xbf16, #tpu.memory_space<vmem>>, vector<128x128xbf16>
    %cst_29 = arith.constant dense<0.000000e+00> : vector<16x128xf32>
    %47 = tpu.matmul %43, %46, %cst_29 {dimension_numbers = #tpu.dot_dimension_numbers<[1], [0], [0], [1], [0, 0, 1, 1], [], []>} : vector<16x128xbf16>, vector<128x128xbf16>, vector<16x128xf32> -> vector<16x128xf32>
    %48 = arith.addf %45, %47 : vector<16x128xf32>
    %c0_30 = arith.constant 0 : index
    %c0_31 = arith.constant 0 : index
    %49 = vector.load %arg12[%c0_30, %c0_31] : memref<1x128xf32, #tpu.memory_space<vmem>>, vector<1x128xf32>
    %50 = vector.broadcast %49 : vector<1x128xf32> to vector<16x128xf32>
    %51 = arith.addf %48, %50 : vector<16x128xf32>
    %c4_i32 = arith.constant 4 : i32
    %52 = vector.broadcast %c4_i32 : i32 to vector<16x128xi32>
    %53 = arith.cmpi sge, %16, %52 : vector<16x128xi32>
    %c8_i32_32 = arith.constant 8 : i32
    %54 = vector.broadcast %c8_i32_32 : i32 to vector<16x128xi32>
    %55 = arith.cmpi slt, %16, %54 : vector<16x128xi32>
    %56 = arith.andi %53, %55 : vector<16x128xi1>
    %cst_33 = arith.constant -1.000000e+30 : f32
    %57 = vector.broadcast %cst_33 : f32 to vector<16x128xf32>
    %58 = arith.select %56, %51, %57 : vector<16x128xi1>, vector<16x128xf32>
    %cst_34 = arith.constant dense<0xFF800000> : vector<16xf32>
    %59 = vector.multi_reduction <maximumf>, %58, %cst_34 [1] : vector<16x128xf32> to vector<16xf32>
    %60 = vector.shape_cast %59 : vector<16xf32> to vector<16x1xf32>
    %61 = vector.broadcast %60 : vector<16x1xf32> to vector<16x128xf32>
    %62 = arith.subf %58, %61 : vector<16x128xf32>
    %63 = math.exp %62 : vector<16x128xf32>
    %cst_35 = arith.constant dense<0.000000e+00> : vector<16xf32>
    %64 = vector.multi_reduction <add>, %63, %cst_35 [1] : vector<16x128xf32> to vector<16xf32>
    %65 = vector.shape_cast %64 : vector<16xf32> to vector<16x1xf32>
    %66 = vector.broadcast %65 : vector<16x1xf32> to vector<16x128xf32>
    %67 = arith.divf %63, %66 : vector<16x128xf32>
    %c4_i32_36 = arith.constant 4 : i32
    %68 = vector.broadcast %c4_i32_36 : i32 to vector<16x128xi32>
    %69 = arith.cmpi slt, %16, %68 : vector<16x128xi32>
    %c8_i32_37 = arith.constant 8 : i32
    %70 = vector.broadcast %c8_i32_37 : i32 to vector<16x128xi32>
    %71 = arith.cmpi slt, %16, %70 : vector<16x128xi32>
    %72 = arith.select %71, %67, %33 : vector<16x128xi1>, vector<16x128xf32>
    %73 = arith.select %69, %51, %72 : vector<16x128xi1>, vector<16x128xf32>
    %c0_38 = arith.constant 0 : index
    %c0_39 = arith.constant 0 : index
    %74 = vector.load %arg13[%c0_38, %c0_39] : memref<16x128xf32, #tpu.memory_space<vmem>>, vector<16x128xf32>
    tpu.vector_store %arg13[%c0_38, %c0_39], %73 {strides = array<i32>} : memref<16x128xf32, #tpu.memory_space<vmem>>, vector<16x128xf32>,
    return
  }
  func.func @transform_0(%arg0: i32) -> (i32, i32) {
    %c0_i32 = arith.constant 0 : i32
    %c0_i32_0 = arith.constant 0 : i32
    return %arg0, %c0_i32 : i32, i32
  }
  func.func @transform_1(%arg0: i32) -> (i32, i32) {
    %c0_i32 = arith.constant 0 : i32
    %c0_i32_0 = arith.constant 0 : i32
    %c0_i32_1 = arith.constant 0 : i32
    return %c0_i32, %c0_i32_0 : i32, i32
  }
  func.func @transform_2(%arg0: i32) -> (i32, i32) {
    %c0_i32 = arith.constant 0 : i32
    %c0_i32_0 = arith.constant 0 : i32
    %c0_i32_1 = arith.constant 0 : i32
    return %c0_i32, %c0_i32_0 : i32, i32
  }
  func.func @transform_3(%arg0: i32) -> (i32, i32) {
    %c0_i32 = arith.constant 0 : i32
    %c0_i32_0 = arith.constant 0 : i32
    %c0_i32_1 = arith.constant 0 : i32
    return %c0_i32, %c0_i32_0 : i32, i32
  }
  func.func @transform_4(%arg0: i32) -> (i32, i32) {
    %c0_i32 = arith.constant 0 : i32
    %c0_i32_0 = arith.constant 0 : i32
    %c0_i32_1 = arith.constant 0 : i32
    return %c0_i32, %c0_i32_0 : i32, i32
  }
  func.func @transform_5(%arg0: i32) -> (i32, i32) {
    %c0_i32 = arith.constant 0 : i32
    %c0_i32_0 = arith.constant 0 : i32
    %c0_i32_1 = arith.constant 0 : i32
    return %c0_i32, %c0_i32_0 : i32, i32
  }
  func.func @transform_6(%arg0: i32) -> (i32, i32) {
    %c0_i32 = arith.constant 0 : i32
    %c0_i32_0 = arith.constant 0 : i32
    %c0_i32_1 = arith.constant 0 : i32
    return %c0_i32, %c0_i32_0 : i32, i32
  }
  func.func @transform_7(%arg0: i32) -> (i32, i32) {
    %c0_i32 = arith.constant 0 : i32
    %c0_i32_0 = arith.constant 0 : i32
    %c0_i32_1 = arith.constant 0 : i32
    return %c0_i32, %c0_i32_0 : i32, i32
  }
  func.func @transform_8(%arg0: i32) -> (i32, i32) {
    %c0_i32 = arith.constant 0 : i32
    %c0_i32_0 = arith.constant 0 : i32
    %c0_i32_1 = arith.constant 0 : i32
    return %c0_i32, %c0_i32_0 : i32, i32
  }
  func.func @transform_9(%arg0: i32) -> (i32, i32) {
    %c0_i32 = arith.constant 0 : i32
    %c0_i32_0 = arith.constant 0 : i32
    %c0_i32_1 = arith.constant 0 : i32
    return %c0_i32, %c0_i32_0 : i32, i32
  }
  func.func @transform_10(%arg0: i32) -> (i32, i32) {
    %c0_i32 = arith.constant 0 : i32
    %c0_i32_0 = arith.constant 0 : i32
    %c0_i32_1 = arith.constant 0 : i32
    return %c0_i32, %c0_i32_0 : i32, i32
  }
  func.func @transform_11(%arg0: i32) -> (i32, i32) {
    %c0_i32 = arith.constant 0 : i32
    %c0_i32_0 = arith.constant 0 : i32
    %c0_i32_1 = arith.constant 0 : i32
    return %c0_i32, %c0_i32_0 : i32, i32
  }
  func.func @transform_12(%arg0: i32) -> (i32, i32) {
    %c0_i32 = arith.constant 0 : i32
    %c0_i32_0 = arith.constant 0 : i32
    return %arg0, %c0_i32 : i32, i32
  }
}

</mosaic_0001>

<bundles_post_ra>
// kernel: tpu_custom_call.1
= control target key start
LH: loop header
LB: loop body
LE: loop exit
PB: predicated region body
PF: predicated region fallthrough
CT: control target
= control target key end

     0   :  { %17 = vsyncpa [#allocation3], 0  ;;  %s1566_s0 = inlined_call_operand.hbm [shape: bf16[16,128], index: 0, kind: input, shape index: {}]   ;;  %s1567_s1 = inlined_call_operand.hbm [shape: bf16[128,128], index: 1, kind: input, shape index: {}]   ;;  %s1568_s2 = inlined_call_operand.vmem [shape: f32[1,128], index: 2, kind: input, shape index: {}]   ;;  %s1569_s3 = inlined_call_operand.hbm [shape: bf16[128,128], index: 3, kind: input, shape index: {}]   ;;  %s1570_s4 = inlined_call_operand.hbm [shape: bf16[128,128], index: 4, kind: input, shape index: {}]   ;;  %s1571_s5 = inlined_call_operand.hbm [shape: bf16[128,128], index: 5, kind: input, shape index: {}]   ;;  %s1572_s6 = inlined_call_operand.vmem [shape: f32[1,128], index: 6, kind: input, shape index: {}]   ;;  %s1573_s7 = inlined_call_operand.hbm [shape: bf16[128,128], index: 7, kind: input, shape index: {}]   ;;  %s1574_s8 = inlined_call_operand.vmem [shape: f32[1,128], index: 8, kind: input, shape index: {}]   ;;  %s1575_s9 = inlined_call_operand.hbm [shape: bf16[128,128], index: 9, kind: input, shape index: {}]   ;;  %s1576_s10 = inlined_call_operand.hbm [shape: bf16[128,128], index: 10, kind: input, shape index: {}]   ;;  %s1577_s11 = inlined_call_operand.vmem [shape: f32[1,128], index: 11, kind: input, shape index: {}]   ;;  %s1578_s12 = inlined_call_operand.hbm [shape: f32[16,128], index: 12, kind: output, shape index: {}]  }
   0x1   :  { %18 = vsyncpa [#allocation6], 0 }
   0x2   :  { %19 = vsyncpa [#allocation9], 0 }
   0x3   :  { %20 = vsyncpa [#allocation12], 0 }
   0x4   :  { %21 = vsyncpa [#allocation15], 0 }
   0x5   :  { %22 = vsyncpa [#allocation4], 0  ;;  %s40_s23 = sshll.u32 %s1567_s1, 4  ;;  %s1400_s24 = smov [#allocation5]   ;;  %s41_s23 = int_to_ptr.hbm [resolvable:$true] %s40_s23 }
   0x6   :  { %s42_s25 = sshll.u32 %s1400_s24, 4  ;;  %s68_s28 = sshll.u32 %s1570_s4, 4  ;;  %s43_s25 = int_to_ptr.vmem [resolvable:$true] %s42_s25  ;;  %s69_s28 = int_to_ptr.hbm [resolvable:$true] %s68_s28 }
   0x7   :  { %s1401_s29 = smov 64   ;;  %s1402_s30 = smov 4  }
   0x8   :  { %48 = dma.hbm_to_vmem [thread:$0]  %s41_s23, 1024, %s43_s25, [#allocation6], %s1401_s29, %s1401_s29, %s1402_s30  }
   0x9   :  { %s1403_s13 = smov [#allocation8]   ;;  %s96_s1 = sshll.u32 %s1573_s7, 4  ;;  %s97_s1 = int_to_ptr.hbm [resolvable:$true] %s96_s1 }
   0xa   :  { %s70_s14 = sshll.u32 %s1403_s13, 4  ;;  %s27_s18 = sshll.u32 %s1566_s0, 4  ;;  %s71_s14 = int_to_ptr.vmem [resolvable:$true] %s70_s14  ;;  %s28_s18 = int_to_ptr.hbm [resolvable:$true] %s27_s18 }
   0xb   :  { %76 = dma.hbm_to_vmem [thread:$0]  %s69_s28, 1024, %s71_s14, [#allocation9], %s1401_s29, %s1401_s29, %s1402_s30  }
   0xc   :  { %s1404_s19 = smov [#allocation11]   ;;  %s1405_s21 = smov [#allocation2]  }
   0xd   :  { %s98_s20 = sshll.u32 %s1404_s19, 4  ;;  %s29_s7 = sshll.u32 %s1405_s21, 4  ;;  %s99_s20 = int_to_ptr.vmem [resolvable:$true] %s98_s20  ;;  %s30_s7 = int_to_ptr.vmem [resolvable:$true] %s29_s7 }
   0xe   :  { %104 = dma.hbm_to_vmem [thread:$0]  %s97_s1, 1024, %s99_s20, [#allocation12], %s1401_s29, %s1401_s29, %s1402_s30  }
   0xf   :  { %s55_s24 = sshll.u32 %s1569_s3, 4  ;;  %s81_s26 = sshll.u32 %s1571_s5, 4  ;;  %s56_s24 = int_to_ptr.hbm [resolvable:$true] %s55_s24  ;;  %s82_s26 = int_to_ptr.hbm [resolvable:$true] %s81_s26 }
  0x10   :  { %35 = dma.hbm_to_vmem [thread:$0]  %s28_s18, 128, %s30_s7, [#allocation3], %s1401_s29, %s1401_s29, %s1402_s30  }
  0x11   :  { %s1406_s27 = smov [#allocation7]   ;;  %s1407_s13 = smov [#allocation10]  }
  0x12   :  { %s57_s28 = sshll.u32 %s1406_s27, 4  ;;  %s83_s3 = sshll.u32 %s1407_s13, 4  ;;  %s58_s28 = int_to_ptr.vmem [resolvable:$true] %s57_s28  ;;  %s84_s3 = int_to_ptr.vmem [resolvable:$true] %s83_s3 }
  0x13   :  { %63 = dma.hbm_to_vmem [thread:$0]  %s56_s24, 1024, %s58_s28, [#allocation6], %s1401_s29, %s1401_s29, %s1402_s30  }
  0x14   :  { %s111_s16 = sshll.u32 %s1575_s9, 4  ;;  %s124_s4 = sshll.u32 %s1576_s10, 4  ;;  %s112_s16 = int_to_ptr.hbm [resolvable:$true] %s111_s16  ;;  %s125_s4 = int_to_ptr.hbm [resolvable:$true] %s124_s4 }
  0x15   :  { %89 = dma.hbm_to_vmem [thread:$0]  %s82_s26, 1024, %s84_s3, [#allocation9], %s1401_s29, %s1401_s29, %s1402_s30  }
  0x16   :  { %s1408_s17 = smov [#allocation13]   ;;  %s1409_s19 = smov [#allocation14]  }
  0x17   :  { %s113_s18 = sshll.u32 %s1408_s17, 4  ;;  %s126_s9 = sshll.u32 %s1409_s19, 4  ;;  %s114_s18 = int_to_ptr.vmem [resolvable:$true] %s113_s18  ;;  %s127_s9 = int_to_ptr.vmem [resolvable:$true] %s126_s9 }
  0x18   :  { %119 = dma.hbm_to_vmem [thread:$0]  %s112_s16, 1024, %s114_s18, [#allocation12], %s1401_s29, %s1401_s29, %s1402_s30  }
  0x19   :  { %132 = dma.hbm_to_vmem [thread:$0]  %s125_s4, 1024, %s127_s9, [#allocation15], %s1401_s29, %s1401_s29, %s1402_s30  }
  0x1a   :  { %1388 = dma.done.wait [#allocation3], 128  }
  0x1b   :  { %1389 = vsyncadd [#allocation3], 4294967168 }
  0x1c   :  { %1390 = dma.done.wait [#allocation6], 2048  }
  0x1d   :  { %1391 = vsyncadd [#allocation6], 4294965248 }
  0x1e   :  { %1392 = dma.done.wait [#allocation9], 2048  }
  0x1f   :  { %1393 = vsyncadd [#allocation9], 4294965248 }
  0x20   :  { %1394 = dma.done.wait [#allocation12], 2048  }
  0x21   :  { %1395 = vsyncadd [#allocation12], 4294965248 }
  0x22   :  { %1396 = dma.done.wait [#allocation15], 1024  }
  0x23   :  { %1397 = vsyncadd [#allocation15], 4294966272  ;;  %v1086_v0 = vld [vmem:[#allocation5 + $0x38] sm:$0xff]  ;;  %v1085_v1 = vld [vmem:[#allocation5 + $0x30] sm:$0xff]  ;;  %v421_v47 = vlaneseq  ;;  %s833_s24 = sshll.u32 %s1578_s12, 4  ;;  %s1411_s0 = smov 128   ;;  %s834_s24 = int_to_ptr.hbm [resolvable:$true] %s833_s24 }
  0x24   :  { %243 = vmatpush.bf16.msra.mxu0 %v1086_v0  ;;  %v1094_v2 = vld [vmem:[#allocation10 + $0x38] sm:$0xff]  ;;  %v1093_v3 = vld [vmem:[#allocation10 + $0x30] sm:$0xff]  ;;  %v1084_v4 = vld [vmem:[#allocation5 + $0x28] sm:$0xff]  ;;  %s1412_s25 = smov 8  }
  0x25   :  { %328 = vmatpush.bf16.msra.mxu1 %v1094_v2  ;;  %v1092_v5 = vld [vmem:[#allocation10 + $0x28] sm:$0xff]  ;;  %v1083_v6 = vld [vmem:[#allocation5 + $0x20] sm:$0xff]  ;;  %v1082_v7 = vld [vmem:[#allocation5 + $0x18] sm:$0xff]  ;;  %v1532_v48 = vand.u32 127, %v421_v47 }
  0x26   :  { %v1081_v8 = vld [vmem:[#allocation5 + $0x10] sm:$0xff]  ;;  %v1080_v9 = vld [vmem:[#allocation5 + $0x8] sm:$0xff]  ;;  %v1079_v10 = vld [vmem:[#allocation5] sm:$0xff] }
  0x27   :  { %v1078_v11 = vld [vmem:[#allocation2] sm:$0xff]  ;;  %v1091_v12 = vld [vmem:[#allocation10 + $0x20] sm:$0xff]  ;;  %v1089_v14 = vld [vmem:[#allocation10 + $0x10] sm:$0xff]  ;;  %vm423_vm0 = vcmp.ge.s32.totalorder %v1532_v48, 8  ;;  %vm424_vm1 = vcmp.lt.s32.totalorder %v1532_v48, 28  ;;  %vm771_vm3 = vcmp.ge.s32.totalorder %v1532_v48, 4 }
  0x28   :  { %244 = vmatpush.bf16.msra.mxu0 %v1085_v1  ;;  %v1090_v13 = vld [vmem:[#allocation10 + $0x18] sm:$0xff]  ;;  %v1088_v15 = vld [vmem:[#allocation10 + $0x8] sm:$0xff]  ;;  %v1087_v16 = vld [vmem:[#allocation10] sm:$0xff]  ;;  %vm772_vm4 = vcmp.lt.s32.totalorder %v1532_v48, 8  ;;  %vm820_vm10 = vcmp.lt.s32.totalorder %v1532_v48, 4 }
  0x29   :  { %329 = vmatpush.bf16.msra.mxu1 %v1093_v3  ;;  %v1102_v17 = vld [vmem:[#allocation7 + $0x38] sm:$0xff]  ;;  %v1101_v18 = vld [vmem:[#allocation7 + $0x30] sm:$0xff]  ;;  %v1100_v19 = vld [vmem:[#allocation7 + $0x28] sm:$0xff] }
  0x2a   :  { %407 = vmatpush.bf16.msra.mxu2 %v1102_v17  ;;  %v1099_v20 = vld [vmem:[#allocation7 + $0x20] sm:$0xff]  ;;  %v1148_v22 = vld [vmem:[%s1568_s2] ss:$0 sm:$0xff]  ;;  %v1097_v25 = vld [vmem:[#allocation7 + $0x10] sm:$0xff] }
  0x2b   :  { %v1098_v23 = vld [vmem:[#allocation7 + $0x18] sm:$0xff]  ;;  %v1096_v28 = vld [vmem:[#allocation7 + $0x8] sm:$0xff]  ;;  %v1095_v29 = vld [vmem:[#allocation7] sm:$0xff] }
  0x2c   :  { %245 = vmatpush.bf16.msra.mxu0 %v1084_v4  ;;  %v1126_v30 = vld [vmem:[#allocation13 + $0x38] sm:$0xff]  ;;  %v1125_v34 = vld [vmem:[#allocation13 + $0x30] sm:$0xff]  ;;  %v1124_v35 = vld [vmem:[#allocation13 + $0x28] sm:$0xff] }
  0x2d   :  { %330 = vmatpush.bf16.msra.mxu1 %v1092_v5  ;;  %v1123_v36 = vld [vmem:[#allocation13 + $0x20] sm:$0xff]  ;;  %v1122_v37 = vld [vmem:[#allocation13 + $0x18] sm:$0xff]  ;;  %v1121_v38 = vld [vmem:[#allocation13 + $0x10] sm:$0xff] }
  0x2e   :  { %408 = vmatpush.bf16.msra.mxu2 %v1101_v18  ;;  %v1120_v39 = vld [vmem:[#allocation13 + $0x8] sm:$0xff]  ;;  %v1119_v40 = vld [vmem:[#allocation13] sm:$0xff]  ;;  %v1149_v42 = vld [vmem:[%s1572_s6] ss:$0 sm:$0xff] }
  0x2f   :  { %vm425_vm2 = vmand %vm423_vm0, %vm424_vm1  ;;  %v1110_v53 = vld [vmem:[#allocation8 + $0x38] sm:$0xff]  ;;  %v1109_v54 = vld [vmem:[#allocation8 + $0x30] sm:$0xff] }
  0x30   :  { %246 = vmatpush.bf16.msra.mxu0 %v1083_v6  ;;  %511 = vmatpush.bf16.msra.mxu3 %v1110_v53  ;;  %v1108_v55 = vld [vmem:[#allocation8 + $0x28] sm:$0xff]  ;;  %v1107_v0 = vld [vmem:[#allocation8 + $0x20] sm:$0xff]  ;;  %v1106_v1 = vld [vmem:[#allocation8 + $0x18] sm:$0xff] }
  0x31   :  { %331 = vmatpush.bf16.msra.mxu1 %v1091_v12  ;;  %v1105_v2 = vld [vmem:[#allocation8 + $0x10] sm:$0xff]  ;;  %v1104_v3 = vld [vmem:[#allocation8 + $0x8] sm:$0xff]  ;;  %v1103_v4 = vld [vmem:[#allocation8] sm:$0xff] }
  0x32   :  { %409 = vmatpush.bf16.msra.mxu2 %v1100_v19  ;;  %v1118_v5 = vld [vmem:[#allocation11 + $0x38] sm:$0xff]  ;;  %v1117_v6 = vld [vmem:[#allocation11 + $0x30] sm:$0xff]  ;;  %v1112_v18 = vld [vmem:[#allocation11 + $0x8] sm:$0xff] }
  0x33   :  { %v1113_v17 = vld [vmem:[#allocation11 + $0x10] sm:$0xff]  ;;  %v1111_v19 = vld [vmem:[#allocation11] sm:$0xff]  ;;  %vm773_vm5 = vmand %vm771_vm3, %vm772_vm4 }
  0x34   :  { %247 = vmatpush.bf16.msra.mxu0 %v1082_v7  ;;  %512 = vmatpush.bf16.msra.mxu3 %v1109_v54  ;;  %v1116_v7 = vld [vmem:[#allocation11 + $0x28] sm:$0xff] }
  0x35   :  { %332 = vmatpush.bf16.msra.mxu1 %v1090_v13 }
  0x36   :  { %410 = vmatpush.bf16.msra.mxu2 %v1099_v20  ;;  %v1134_v20 = vld [vmem:[#allocation14 + $0x38] sm:$0xff] }
  0x38   :  { %248 = vmatpush.bf16.msra.mxu0 %v1081_v8  ;;  %513 = vmatpush.bf16.msra.mxu3 %v1108_v55  ;;  %v1115_v8 = vld [vmem:[#allocation11 + $0x20] sm:$0xff] }
  0x39   :  { %333 = vmatpush.bf16.msra.mxu1 %v1089_v14 }
  0x3a   :  { %411 = vmatpush.bf16.msra.mxu2 %v1098_v23  ;;  %v1131_v23 = vld [vmem:[#allocation14 + $0x20] sm:$0xff] }
  0x3c   :  { %249 = vmatpush.bf16.msra.mxu0 %v1080_v9  ;;  %514 = vmatpush.bf16.msra.mxu3 %v1107_v0 }
  0x3d   :  { %334 = vmatpush.bf16.msra.mxu1 %v1088_v15 }
  0x3e   :  { %412 = vmatpush.bf16.msra.mxu2 %v1097_v25 }
  0x40   :  { %250 = vmatpush.bf16.msra.mxu0 %v1079_v10  ;;  %515 = vmatpush.bf16.msra.mxu3 %v1106_v1  ;;  %v1114_v10 = vld [vmem:[#allocation11 + $0x18] sm:$0xff] }
  0x41   :  { %335 = vmatpush.bf16.msra.mxu1 %v1087_v16 }
  0x42   :  { %413 = vmatpush.bf16.msra.mxu2 %v1096_v28  ;;  %v1129_v28 = vld [vmem:[#allocation14 + $0x10] sm:$0xff] }
  0x43   :  { %251 = vmatmul.bf16.vlgmr.msra.gmra.mxu0 %v1078_v11 }
  0x44   :  { %516 = vmatpush.bf16.msra.mxu3 %v1105_v2  ;;  %594 = vmatpush.bf16.msrb.mxu0 %v1118_v5 }
  0x45   :  { %689 = vmatpush.bf16.msrb.mxu1 %v1134_v20 }
  0x46   :  { %414 = vmatpush.bf16.msra.mxu2 %v1095_v29  ;;  %v1128_v29 = vld [vmem:[#allocation14 + $0x8] sm:$0xff] }
  0x48   :  { %517 = vmatpush.bf16.msra.mxu3 %v1104_v3  ;;  %595 = vmatpush.bf16.msrb.mxu0 %v1117_v6 }
  0x4a   :  { %751 = vmatpush.bf16.msrb.mxu2 %v1126_v30  ;;  %v1127_v30 = vld [vmem:[#allocation14] sm:$0xff] }
  0x4c   :  { %518 = vmatpush.bf16.msra.mxu3 %v1103_v4  ;;  %596 = vmatpush.bf16.msrb.mxu0 %v1116_v7 }
  0x4e   :  { %752 = vmatpush.bf16.msrb.mxu2 %v1125_v34 }
  0x50   :  { %597 = vmatpush.bf16.msrb.mxu0 %v1115_v8 }
  0x52   :  { %753 = vmatpush.bf16.msrb.mxu2 %v1124_v35 }
  0x54   :  { %598 = vmatpush.bf16.msrb.mxu0 %v1114_v10 }
  0x56   :  { %754 = vmatpush.bf16.msrb.mxu2 %v1123_v36 }
  0x58   :  { %599 = vmatpush.bf16.msrb.mxu0 %v1113_v17 }
  0x5a   :  { %755 = vmatpush.bf16.msrb.mxu2 %v1122_v37 }
  0x5c   :  { %600 = vmatpush.bf16.msrb.mxu0 %v1112_v18 }
  0x5e   :  { %756 = vmatpush.bf16.msrb.mxu2 %v1121_v38  ;;  %v1151_v38 = vld [vmem:[%s1577_s11] ss:$0 sm:$0xff] }
  0x60   :  { %601 = vmatpush.bf16.msrb.mxu0 %v1111_v19 }
  0x62   :  { %757 = vmatpush.bf16.msrb.mxu2 %v1120_v39 }
  0x66   :  { %758 = vmatpush.bf16.msrb.mxu2 %v1119_v40 }
  0xc0   :  { %v252_v21 = vpop.f32.mrf.mxu0 }
  0xc1   :  { %v253_v24 = vadd.f32 %v1148_v22, %v252_v21  ;;  %v1133_v21 = vld [vmem:[#allocation14 + $0x30] sm:$0xff] }
  0xc2   :  { %690 = vmatpush.bf16.msrb.mxu1 %v1133_v21 }
  0xc3   :  { %1152 = vtanh.f32 %v253_v24  ;;  %v1130_v24 = vld [vmem:[#allocation14 + $0x18] sm:$0xff] }
  0xc8   :  { %v254_v26 = vpop.f32.mrf.mxu0 }
  0xc9   :  { %v255_v27 = vadd.f32 %v1148_v22, %v254_v26  ;;  %v1153_v31 = vpop.eup %1152  ;;  %v1132_v22 = vld [vmem:[#allocation14 + $0x28] sm:$0xff] }
  0xca   :  { %691 = vmatpush.bf16.msrb.mxu1 %v1132_v22 }
  0xcb   :  { %1154 = vtanh.f32 %v255_v27 }
  0xce   :  { %692 = vmatpush.bf16.msrb.mxu1 %v1131_v23 }
  0xd1   :  { %v1155_v32 = vpop.eup %1154 }
  0xd2   :  { %v259_v33 = vpack.c.bf16 %v1155_v32, %v1153_v31  ;;  %693 = vmatpush.bf16.msrb.mxu1 %v1130_v24  ;;  %v1150_v32 = vld [vmem:[%s1574_s8] ss:$0 sm:$0xff]  ;;  %s1410_s8 = smov [#allocation16]  }
  0xd3   :  { %s831_s11 = sshll.u32 %s1410_s8, 4  ;;  %s832_s11 = int_to_ptr.vmem [resolvable:$true] %s831_s11 }
  0xd4   :  { %336 = vmatmul.bf16.vlgmr.msra.gmra.mxu1 %v259_v33 }
  0xd6   :  { %694 = vmatpush.bf16.msrb.mxu1 %v1129_v28 }
  0xda   :  { %695 = vmatpush.bf16.msrb.mxu1 %v1128_v29 }
  0xde   :  { %696 = vmatpush.bf16.msrb.mxu1 %v1127_v30 }
 0x151   :  { %v337_v41 = vpop.f32.mrf.mxu1 }
 0x152   :  { %v338_v44 = vadd.f32 %v1149_v42, %v337_v41 }
 0x159   :  { %v339_v43 = vpop.f32.mrf.mxu1 }
 0x15a   :  { %v340_v45 = vadd.f32 %v1149_v42, %v339_v43 }
 0x15c   :  { %v342_v46 = vpack.c.bf16 %v340_v45, %v338_v44 }
 0x15e   :  { %415 = vmatmul.bf16.vlgmr.msra.gmra.mxu2 %v342_v46 }
 0x16e   :  { %759 = vmatmul.bf16.vlgmr.msrb.gmra.mxu2 %v259_v33 }
 0x1e1   :  { %v416_v49 = vpop.f32.mrf.mxu2 }
 0x1e2   :  { %v426_v50 = vsel %vm425_vm2, %v416_v49, -1e+30 }
 0x1e3   :  { %428 = vmax.xlane.f32.xlu0 %v426_v50 }
 0x1e9   :  { %v418_v51 = vpop.f32.mrf.mxu2 }
 0x1ea   :  { %v427_v52 = vsel %vm425_vm2, %v418_v51, -1e+30 }
 0x1eb   :  { %430 = vmax.xlane.f32.xlu0 %v427_v52 }
 0x1f1   :  { %v760_v37 = vpop.f32.mrf.mxu2 }
 0x1f9   :  { %v762_v43 = vpop.f32.mrf.mxu2 }
 0x256   :  { %v429_v56 = vpop.xlane.xlu0 %428 }
 0x257   :  { %v432_v57 = vsub.f32 %v426_v50, %v429_v56 }
 0x259   :  { %v434_v58 = vmul.f32 1.442695, %v432_v57 }
 0x25b   :  { %1156 = vpow2.f32 %v434_v58 }
 0x25e   :  { %v431_v59 = vpop.xlane.xlu0 %430 }
 0x25f   :  { %v433_v60 = vsub.f32 %v427_v52, %v431_v59 }
 0x261   :  { %v1157_v61 = vpop.eup %1156  ;;  %v436_v62 = vmul.f32 1.442695, %v433_v60 }
 0x262   :  { %438 = vadd.xlane.f32.xlu1 %v1157_v61 }
 0x263   :  { %1158 = vpow2.f32 %v436_v62 }
 0x269   :  { %v1159_v63 = vpop.eup %1158 }
 0x26a   :  { %440 = vadd.xlane.f32.xlu1 %v1159_v63 }
 0x2d5   :  { %v439_v9 = vpop.xlane.xlu1 %438 }
 0x2d6   :  { %1160 = vrcp.f32 %v439_v9 }
 0x2dc   :  { %v1161_v12 = vpop.eup %1160 }
 0x2dd   :  { %v441_v11 = vpop.xlane.xlu1 %440  ;;  %v1536_v14 = vmul.f32 %v1161_v12, %v1157_v61 }
 0x2de   :  { %1162 = vrcp.f32 %v441_v11 }
 0x2e4   :  { %v1163_v13 = vpop.eup %1162 }
 0x2e5   :  { %v1538_v15 = vmul.f32 %v1163_v13, %v1159_v63 }
 0x2e7   :  { %v446_v16 = vpack.c.bf16 %v1538_v15, %v1536_v14 }
 0x2e9   :  { %519 = vmatmul.bf16.vlgmr.msra.gmra.mxu3 %v446_v16 }
 0x36c   :  { %v520_v25 = vpop.f32.mrf.mxu3 }
 0x374   :  { %v522_v26 = vpop.f32.mrf.mxu3 }
 0x375   :  { %v525_v27 = vpack.c.bf16 %v522_v26, %v520_v25 }
 0x377   :  { %602 = vmatmul.bf16.vlgmr.msrb.gmra.mxu0 %v525_v27 }
 0x3f4   :  { %v603_v31 = vpop.f32.mrf.mxu0 }
 0x3f5   :  { %v604_v34 = vadd.f32 %v1150_v32, %v603_v31 }
 0x3fc   :  { %v605_v33 = vpop.f32.mrf.mxu0 }
 0x3fd   :  { %v606_v35 = vadd.f32 %v1150_v32, %v605_v33 }
 0x3ff   :  { %v608_v36 = vpack.c.bf16 %v606_v35, %v604_v34 }
 0x401   :  { %697 = vmatmul.bf16.vlgmr.msrb.gmra.mxu1 %v608_v36 }
 0x47e   :  { %v698_v39 = vpop.f32.mrf.mxu1 }
 0x47f   :  { %v761_v40 = vadd.f32 %v760_v37, %v698_v39 }
 0x481   :  { %v769_v41 = vadd.f32 %v1151_v38, %v761_v40 }
 0x483   :  { %v774_v42 = vsel %vm773_vm5, %v769_v41, -1e+30 }
 0x484   :  { %776 = vmax.xlane.f32.xlu2 %v774_v42 }
 0x486   :  { %v700_v44 = vpop.f32.mrf.mxu1 }
 0x487   :  { %v763_v45 = vadd.f32 %v762_v43, %v700_v44 }
 0x489   :  { %v770_v46 = vadd.f32 %v1151_v38, %v763_v45 }
 0x48b   :  { %v775_v47 = vsel %vm773_vm5, %v770_v46, -1e+30 }
 0x48c   :  { %778 = vmax.xlane.f32.xlu2 %v775_v47 }
 0x4f7   :  { %v777_v49 = vpop.xlane.xlu2 %776 }
 0x4f8   :  { %v780_v50 = vsub.f32 %v774_v42, %v777_v49 }
 0x4fa   :  { %v782_v51 = vmul.f32 1.442695, %v780_v50 }
 0x4fc   :  { %1164 = vpow2.f32 %v782_v51 }
 0x4ff   :  { %v779_v52 = vpop.xlane.xlu2 %778 }
 0x500   :  { %v781_v53 = vsub.f32 %v775_v47, %v779_v52 }
 0x502   :  { %v1165_v54 = vpop.eup %1164  ;;  %v784_v55 = vmul.f32 1.442695, %v781_v53 }
 0x503   :  { %786 = vadd.xlane.f32.xlu0 %v1165_v54 }
 0x504   :  { %1166 = vpow2.f32 %v784_v55 }
 0x50a   :  { %v1167_v56 = vpop.eup %1166 }
 0x50b   :  { %788 = vadd.xlane.f32.xlu1 %v1167_v56 }
 0x576   :  { %v787_v57 = vpop.xlane.xlu0 %786 }
 0x577   :  { %1168 = vrcp.f32 %v787_v57  ;;  %v801_v62 = vand.u32 2147483648, %v787_v57  ;;  %v799_v0 = vand.u32 2147483647, %v787_v57  ;;  %vm795_vm7 = vweird.f32 %v787_v57 }
 0x579   :  { %v802_v3 = vor.u32 1.1754944e-38, %v801_v62  ;;  %vm800_vm9 = vcmp.eq.f32.partialorder %v799_v0, 8.507059e+37 }
 0x57d   :  { %v1169_v58 = vpop.eup %1168 }
 0x57e   :  { %v791_v59 = vmul.f32 %v1169_v58, %v787_v57  ;;  %v789_v60 = vpop.xlane.xlu1 %788  ;;  %vm796_vm6 = vweird.f32 %v1169_v58 }
 0x57f   :  { %1170 = vrcp.f32 %v789_v60  ;;  %vm797_vm8 = vmor %vm795_vm7, %vm796_vm6  ;;  %v816_v9 = vand.u32 2147483648, %v789_v60  ;;  %v814_v12 = vand.u32 2147483647, %v789_v60  ;;  %vm810_vm12 = vweird.f32 %v789_v60 }
 0x580   :  { %v792_v61 = vsub.f32 1.0, %v791_v59 }
 0x581   :  { %v817_v17 = vor.u32 1.1754944e-38, %v816_v9  ;;  %vm815_vm14 = vcmp.eq.f32.partialorder %v814_v12, 8.507059e+37 }
 0x582   :  { %v793_v63 = vmul.f32 %v1169_v58, %v792_v61 }
 0x584   :  { %v794_v1 = vadd.f32 %v1169_v58, %v793_v63 }
 0x585   :  { %v1171_v2 = vpop.eup %1170 }
 0x586   :  { %v798_v4 = vsel %vm797_vm8, %v1169_v58, %v794_v1  ;;  %v806_v5 = vmul.f32 %v1171_v2, %v789_v60  ;;  %vm811_vm11 = vweird.f32 %v1171_v2 }
 0x587   :  { %v803_v6 = vsel %vm800_vm9, %v802_v3, %v798_v4  ;;  %vm812_vm13 = vmor %vm810_vm12, %vm811_vm11 }
 0x588   :  { %v804_v7 = vmul.f32 %v1165_v54, %v803_v6  ;;  %v807_v8 = vsub.f32 1.0, %v806_v5 }
 0x58a   :  { %v821_v10 = vsel %vm772_vm4, %v804_v7, %v1536_v14  ;;  %v808_v11 = vmul.f32 %v1171_v2, %v807_v8 }
 0x58b   :  { %v823_v13 = vsel %vm820_vm10, %v769_v41, %v821_v10 }
 0x58c   :  { %v809_v16 = vadd.f32 %v1171_v2, %v808_v11  ;;  %825 = vst [vmem:[#allocation16] sm:$0xff] %v823_v13 }
 0x58e   :  { %v813_v18 = vsel %vm812_vm13, %v1171_v2, %v809_v16 }
 0x58f   :  { %v818_v14 = vsel %vm815_vm14, %v817_v17, %v813_v18 }
 0x590   :  { %v819_v19 = vmul.f32 %v1167_v56, %v818_v14 }
 0x592   :  { %v822_v20 = vsel %vm772_vm4, %v819_v19, %v1538_v15 }
 0x593   :  { %v824_v21 = vsel %vm820_vm10, %v770_v46, %v822_v20 }
 0x594   :  { %826 = vst [vmem:[#allocation16 + $0x8] sm:$0xff] %v824_v21 }
 0x595   :  { %839 = dma.vmem_to_hbm [thread:$0]  %s832_s11, 256, %s834_s24, [#allocation4], %s1411_s0, %s1411_s0, %s1412_s25  }
 0x596   :  { %1398 = dma.done.wait [#allocation4], 256  }
 0x597   :  { %1399 = vsyncadd [#allocation4], 4294967040 }
 0x598   :  { %844 = vsyncpa [#allocation3], 1 }
 0x599   :  { %845 = vsyncpa [#allocation6], 1 }
 0x59a   :  { %846 = vsyncpa [#allocation9], 1 }
 0x59b   :  { %847 = vsyncpa [#allocation12], 1 }
 0x59c   :  { %848 = vsyncpa [#allocation15], 1 }
 0x59d   :  { %849 = vsyncpa [#allocation4], 1 }

// kernel: tpu_custom_call.1
= control target key start
LH: loop header
LB: loop body
LE: loop exit
PB: predicated region body
PF: predicated region fallthrough
CT: control target
= control target key end

     0   :  { %17 = vsyncpa [#allocation3], 0  ;;  %s1566_s0 = inlined_call_operand.hbm [shape: bf16[16,128], index: 0, kind: input, shape index: {}]   ;;  %s1567_s1 = inlined_call_operand.hbm [shape: bf16[128,128], index: 1, kind: input, shape index: {}]   ;;  %s1568_s2 = inlined_call_operand.vmem [shape: f32[1,128], index: 2, kind: input, shape index: {}]   ;;  %s1569_s3 = inlined_call_operand.hbm [shape: bf16[128,128], index: 3, kind: input, shape index: {}]   ;;  %s1570_s4 = inlined_call_operand.hbm [shape: bf16[128,128], index: 4, kind: input, shape index: {}]   ;;  %s1571_s5 = inlined_call_operand.hbm [shape: bf16[128,128], index: 5, kind: input, shape index: {}]   ;;  %s1572_s6 = inlined_call_operand.vmem [shape: f32[1,128], index: 6, kind: input, shape index: {}]   ;;  %s1573_s7 = inlined_call_operand.hbm [shape: bf16[128,128], index: 7, kind: input, shape index: {}]   ;;  %s1574_s8 = inlined_call_operand.vmem [shape: f32[1,128], index: 8, kind: input, shape index: {}]   ;;  %s1575_s9 = inlined_call_operand.hbm [shape: bf16[128,128], index: 9, kind: input, shape index: {}]   ;;  %s1576_s10 = inlined_call_operand.hbm [shape: bf16[128,128], index: 10, kind: input, shape index: {}]   ;;  %s1577_s11 = inlined_call_operand.vmem [shape: f32[1,128], index: 11, kind: input, shape index: {}]   ;;  %s1578_s12 = inlined_call_operand.hbm [shape: f32[16,128], index: 12, kind: output, shape index: {}]  }
   0x1   :  { %18 = vsyncpa [#allocation6], 0 }
   0x2   :  { %19 = vsyncpa [#allocation9], 0 }
   0x3   :  { %20 = vsyncpa [#allocation12], 0 }
   0x4   :  { %21 = vsyncpa [#allocation15], 0 }
   0x5   :  { %22 = vsyncpa [#allocation4], 0  ;;  %s40_s23 = sshll.u32 %s1567_s1, 4  ;;  %s1400_s24 = smov [#allocation5]   ;;  %s41_s23 = int_to_ptr.hbm [resolvable:$true] %s40_s23 }
   0x6   :  { %s42_s25 = sshll.u32 %s1400_s24, 4  ;;  %s68_s28 = sshll.u32 %s1570_s4, 4  ;;  %s43_s25 = int_to_ptr.vmem [resolvable:$true] %s42_s25  ;;  %s69_s28 = int_to_ptr.hbm [resolvable:$true] %s68_s28 }
   0x7   :  { %s1401_s29 = smov 64   ;;  %s1402_s30 = smov 4  }
   0x8   :  { %48 = dma.hbm_to_vmem [thread:$0]  %s41_s23, 1024, %s43_s25, [#allocation6], %s1401_s29, %s1401_s29, %s1402_s30  }
   0x9   :  { %s1403_s13 = smov [#allocation8]   ;;  %s96_s1 = sshll.u32 %s1573_s7, 4  ;;  %s97_s1 = int_to_ptr.hbm [resolvable:$true] %s96_s1 }
   0xa   :  { %s70_s14 = sshll.u32 %s1403_s13, 4  ;;  %s27_s18 = sshll.u32 %s1566_s0, 4  ;;  %s71_s14 = int_to_ptr.vmem [resolvable:$true] %s70_s14  ;;  %s28_s18 = int_to_ptr.hbm [resolvable:$true] %s27_s18 }
   0xb   :  { %76 = dma.hbm_to_vmem [thread:$0]  %s69_s28, 1024, %s71_s14, [#allocation9], %s1401_s29, %s1401_s29, %s1402_s30  }
   0xc   :  { %s1404_s19 = smov [#allocation11]   ;;  %s1405_s21 = smov [#allocation2]  }
   0xd   :  { %s98_s20 = sshll.u32 %s1404_s19, 4  ;;  %s29_s7 = sshll.u32 %s1405_s21, 4  ;;  %s99_s20 = int_to_ptr.vmem [resolvable:$true] %s98_s20  ;;  %s30_s7 = int_to_ptr.vmem [resolvable:$true] %s29_s7 }
   0xe   :  { %104 = dma.hbm_to_vmem [thread:$0]  %s97_s1, 1024, %s99_s20, [#allocation12], %s1401_s29, %s1401_s29, %s1402_s30  }
   0xf   :  { %s55_s24 = sshll.u32 %s1569_s3, 4  ;;  %s81_s26 = sshll.u32 %s1571_s5, 4  ;;  %s56_s24 = int_to_ptr.hbm [resolvable:$true] %s55_s24  ;;  %s82_s26 = int_to_ptr.hbm [resolvable:$true] %s81_s26 }
  0x10   :  { %35 = dma.hbm_to_vmem [thread:$0]  %s28_s18, 128, %s30_s7, [#allocation3], %s1401_s29, %s1401_s29, %s1402_s30  }
  0x11   :  { %s1406_s27 = smov [#allocation7]   ;;  %s1407_s13 = smov [#allocation10]  }
  0x12   :  { %s57_s28 = sshll.u32 %s1406_s27, 4  ;;  %s83_s3 = sshll.u32 %s1407_s13, 4  ;;  %s58_s28 = int_to_ptr.vmem [resolvable:$true] %s57_s28  ;;  %s84_s3 = int_to_ptr.vmem [resolvable:$true] %s83_s3 }
  0x13   :  { %63 = dma.hbm_to_vmem [thread:$0]  %s56_s24, 1024, %s58_s28, [#allocation6], %s1401_s29, %s1401_s29, %s1402_s30  }
  0x14   :  { %s111_s16 = sshll.u32 %s1575_s9, 4  ;;  %s124_s4 = sshll.u32 %s1576_s10, 4  ;;  %s112_s16 = int_to_ptr.hbm [resolvable:$true] %s111_s16  ;;  %s125_s4 = int_to_ptr.hbm [resolvable:$true] %s124_s4 }
  0x15   :  { %89 = dma.hbm_to_vmem [thread:$0]  %s82_s26, 1024, %s84_s3, [#allocation9], %s1401_s29, %s1401_s29, %s1402_s30  }
  0x16   :  { %s1408_s17 = smov [#allocation13]   ;;  %s1409_s19 = smov [#allocation14]  }
  0x17   :  { %s113_s18 = sshll.u32 %s1408_s17, 4  ;;  %s126_s9 = sshll.u32 %s1409_s19, 4  ;;  %s114_s18 = int_to_ptr.vmem [resolvable:$true] %s113_s18  ;;  %s127_s9 = int_to_ptr.vmem [resolvable:$true] %s126_s9 }
  0x18   :  { %119 = dma.hbm_to_vmem [thread:$0]  %s112_s16, 1024, %s114_s18, [#allocation12], %s1401_s29, %s1401_s29, %s1402_s30  }
  0x19   :  { %132 = dma.hbm_to_vmem [thread:$0]  %s125_s4, 1024, %s127_s9, [#allocation15], %s1401_s29, %s1401_s29, %s1402_s30  }
  0x1a   :  { %1388 = dma.done.wait [#allocation3], 128  }
  0x1b   :  { %1389 = vsyncadd [#allocation3], 4294967168 }
  0x1c   :  { %1390 = dma.done.wait [#allocation6], 2048  }
  0x1d   :  { %1391 = vsyncadd [#allocation6], 4294965248 }
  0x1e   :  { %1392 = dma.done.wait [#allocation9], 2048  }
  0x1f   :  { %1393 = vsyncadd [#allocation9], 4294965248 }
  0x20   :  { %1394 = dma.done.wait [#allocation12], 2048  }
  0x21   :  { %1395 = vsyncadd [#allocation12], 4294965248 }
  0x22   :  { %1396 = dma.done.wait [#allocation15], 1024  }
  0x23   :  { %1397 = vsyncadd [#allocation15], 4294966272  ;;  %v1086_v0 = vld [vmem:[#allocation5 + $0x38] sm:$0xff]  ;;  %v1085_v1 = vld [vmem:[#allocation5 + $0x30] sm:$0xff]  ;;  %v421_v47 = vlaneseq  ;;  %s833_s24 = sshll.u32 %s1578_s12, 4  ;;  %s1411_s0 = smov 128   ;;  %s834_s24 = int_to_ptr.hbm [resolvable:$true] %s833_s24 }
  0x24   :  { %243 = vmatpush.bf16.msra.mxu0 %v1086_v0  ;;  %v1094_v2 = vld [vmem:[#allocation10 + $0x38] sm:$0xff]  ;;  %v1093_v3 = vld [vmem:[#allocation10 + $0x30] sm:$0xff]  ;;  %v1084_v4 = vld [vmem:[#allocation5 + $0x28] sm:$0xff]  ;;  %s1412_s25 = smov 8  }
  0x25   :  { %328 = vmatpush.bf16.msra.mxu1 %v1094_v2  ;;  %v1092_v5 = vld [vmem:[#allocation10 + $0x28] sm:$0xff]  ;;  %v1083_v6 = vld [vmem:[#allocation5 + $0x20] sm:$0xff]  ;;  %v1082_v7 = vld [vmem:[#allocation5 + $0x18] sm:$0xff]  ;;  %v1532_v48 = vand.u32 127, %v421_v47 }
  0x26   :  { %v1081_v8 = vld [vmem:[#allocation5 + $0x10] sm:$0xff]  ;;  %v1080_v9 = vld [vmem:[#allocation5 + $0x8] sm:$0xff]  ;;  %v1079_v10 = vld [vmem:[#allocation5] sm:$0xff] }
  0x27   :  { %v1078_v11 = vld [vmem:[#allocation2] sm:$0xff]  ;;  %v1091_v12 = vld [vmem:[#allocation10 + $0x20] sm:$0xff]  ;;  %v1089_v14 = vld [vmem:[#allocation10 + $0x10] sm:$0xff]  ;;  %vm423_vm0 = vcmp.ge.s32.totalorder %v1532_v48, 8  ;;  %vm424_vm1 = vcmp.lt.s32.totalorder %v1532_v48, 28  ;;  %vm771_vm3 = vcmp.ge.s32.totalorder %v1532_v48, 4 }
  0x28   :  { %244 = vmatpush.bf16.msra.mxu0 %v1085_v1  ;;  %v1090_v13 = vld [vmem:[#allocation10 + $0x18] sm:$0xff]  ;;  %v1088_v15 = vld [vmem:[#allocation10 + $0x8] sm:$0xff]  ;;  %v1087_v16 = vld [vmem:[#allocation10] sm:$0xff]  ;;  %vm772_vm4 = vcmp.lt.s32.totalorder %v1532_v48, 8  ;;  %vm820_vm10 = vcmp.lt.s32.totalorder %v1532_v48, 4 }
  0x29   :  { %329 = vmatpush.bf16.msra.mxu1 %v1093_v3  ;;  %v1102_v17 = vld [vmem:[#allocation7 + $0x38] sm:$0xff]  ;;  %v1101_v18 = vld [vmem:[#allocation7 + $0x30] sm:$0xff]  ;;  %v1100_v19 = vld [vmem:[#allocation7 + $0x28] sm:$0xff] }
  0x2a   :  { %407 = vmatpush.bf16.msra.mxu2 %v1102_v17  ;;  %v1099_v20 = vld [vmem:[#allocation7 + $0x20] sm:$0xff]  ;;  %v1148_v22 = vld [vmem:[%s1568_s2] ss:$0 sm:$0xff]  ;;  %v1097_v25 = vld [vmem:[#allocation7 + $0x10] sm:$0xff] }
  0x2b   :  { %v1098_v23 = vld [vmem:[#allocation7 + $0x18] sm:$0xff]  ;;  %v1096_v28 = vld [vmem:[#allocation7 + $0x8] sm:$0xff]  ;;  %v1095_v29 = vld [vmem:[#allocation7] sm:$0xff] }
  0x2c   :  { %245 = vmatpush.bf16.msra.mxu0 %v1084_v4  ;;  %v1126_v30 = vld [vmem:[#allocation13 + $0x38] sm:$0xff]  ;;  %v1125_v34 = vld [vmem:[#allocation13 + $0x30] sm:$0xff]  ;;  %v1124_v35 = vld [vmem:[#allocation13 + $0x28] sm:$0xff] }
  0x2d   :  { %330 = vmatpush.bf16.msra.mxu1 %v1092_v5  ;;  %v1123_v36 = vld [vmem:[#allocation13 + $0x20] sm:$0xff]  ;;  %v1122_v37 = vld [vmem:[#allocation13 + $0x18] sm:$0xff]  ;;  %v1121_v38 = vld [vmem:[#allocation13 + $0x10] sm:$0xff] }
  0x2e   :  { %408 = vmatpush.bf16.msra.mxu2 %v1101_v18  ;;  %v1120_v39 = vld [vmem:[#allocation13 + $0x8] sm:$0xff]  ;;  %v1119_v40 = vld [vmem:[#allocation13] sm:$0xff]  ;;  %v1149_v42 = vld [vmem:[%s1572_s6] ss:$0 sm:$0xff] }
  0x2f   :  { %vm425_vm2 = vmand %vm423_vm0, %vm424_vm1  ;;  %v1110_v53 = vld [vmem:[#allocation8 + $0x38] sm:$0xff]  ;;  %v1109_v54 = vld [vmem:[#allocation8 + $0x30] sm:$0xff] }
  0x30   :  { %246 = vmatpush.bf16.msra.mxu0 %v1083_v6  ;;  %511 = vmatpush.bf16.msra.mxu3 %v1110_v53  ;;  %v1108_v55 = vld [vmem:[#allocation8 + $0x28] sm:$0xff]  ;;  %v1107_v0 = vld [vmem:[#allocation8 + $0x20] sm:$0xff]  ;;  %v1106_v1 = vld [vmem:[#allocation8 + $0x18] sm:$0xff] }
  0x31   :  { %331 = vmatpush.bf16.msra.mxu1 %v1091_v12  ;;  %v1105_v2 = vld [vmem:[#allocation8 + $0x10] sm:$0xff]  ;;  %v1104_v3 = vld [vmem:[#allocation8 + $0x8] sm:$0xff]  ;;  %v1103_v4 = vld [vmem:[#allocation8] sm:$0xff] }
  0x32   :  { %409 = vmatpush.bf16.msra.mxu2 %v1100_v19  ;;  %v1118_v5 = vld [vmem:[#allocation11 + $0x38] sm:$0xff]  ;;  %v1117_v6 = vld [vmem:[#allocation11 + $0x30] sm:$0xff]  ;;  %v1112_v18 = vld [vmem:[#allocation11 + $0x8] sm:$0xff] }
  0x33   :  { %v1113_v17 = vld [vmem:[#allocation11 + $0x10] sm:$0xff]  ;;  %v1111_v19 = vld [vmem:[#allocation11] sm:$0xff]  ;;  %vm773_vm5 = vmand %vm771_vm3, %vm772_vm4 }
  0x34   :  { %247 = vmatpush.bf16.msra.mxu0 %v1082_v7  ;;  %512 = vmatpush.bf16.msra.mxu3 %v1109_v54  ;;  %v1116_v7 = vld [vmem:[#allocation11 + $0x28] sm:$0xff] }
  0x35   :  { %332 = vmatpush.bf16.msra.mxu1 %v1090_v13 }
  0x36   :  { %410 = vmatpush.bf16.msra.mxu2 %v1099_v20  ;;  %v1134_v20 = vld [vmem:[#allocation14 + $0x38] sm:$0xff] }
  0x38   :  { %248 = vmatpush.bf16.msra.mxu0 %v1081_v8  ;;  %513 = vmatpush.bf16.msra.mxu3 %v1108_v55  ;;  %v1115_v8 = vld [vmem:[#allocation11 + $0x20] sm:$0xff] }
  0x39   :  { %333 = vmatpush.bf16.msra.mxu1 %v1089_v14 }
  0x3a   :  { %411 = vmatpush.bf16.msra.mxu2 %v1098_v23  ;;  %v1131_v23 = vld [vmem:[#allocation14 + $0x20] sm:$0xff] }
  0x3c   :  { %249 = vmatpush.bf16.msra.mxu0 %v1080_v9  ;;  %514 = vmatpush.bf16.msra.mxu3 %v1107_v0 }
  0x3d   :  { %334 = vmatpush.bf16.msra.mxu1 %v1088_v15 }
  0x3e   :  { %412 = vmatpush.bf16.msra.mxu2 %v1097_v25 }
  0x40   :  { %250 = vmatpush.bf16.msra.mxu0 %v1079_v10  ;;  %515 = vmatpush.bf16.msra.mxu3 %v1106_v1  ;;  %v1114_v10 = vld [vmem:[#allocation11 + $0x18] sm:$0xff] }
  0x41   :  { %335 = vmatpush.bf16.msra.mxu1 %v1087_v16 }
  0x42   :  { %413 = vmatpush.bf16.msra.mxu2 %v1096_v28  ;;  %v1129_v28 = vld [vmem:[#allocation14 + $0x10] sm:$0xff] }
  0x43   :  { %251 = vmatmul.bf16.vlgmr.msra.gmra.mxu0 %v1078_v11 }
  0x44   :  { %516 = vmatpush.bf16.msra.mxu3 %v1105_v2  ;;  %594 = vmatpush.bf16.msrb.mxu0 %v1118_v5 }
  0x45   :  { %689 = vmatpush.bf16.msrb.mxu1 %v1134_v20 }
  0x46   :  { %414 = vmatpush.bf16.msra.mxu2 %v1095_v29  ;;  %v1128_v29 = vld [vmem:[#allocation14 + $0x8] sm:$0xff] }
  0x48   :  { %517 = vmatpush.bf16.msra.mxu3 %v1104_v3  ;;  %595 = vmatpush.bf16.msrb.mxu0 %v1117_v6 }
  0x4a   :  { %751 = vmatpush.bf16.msrb.mxu2 %v1126_v30  ;;  %v1127_v30 = vld [vmem:[#allocation14] sm:$0xff] }
  0x4c   :  { %518 = vmatpush.bf16.msra.mxu3 %v1103_v4  ;;  %596 = vmatpush.bf16.msrb.mxu0 %v1116_v7 }
  0x4e   :  { %752 = vmatpush.bf16.msrb.mxu2 %v1125_v34 }
  0x50   :  { %597 = vmatpush.bf16.msrb.mxu0 %v1115_v8 }
  0x52   :  { %753 = vmatpush.bf16.msrb.mxu2 %v1124_v35 }
  0x54   :  { %598 = vmatpush.bf16.msrb.mxu0 %v1114_v10 }
  0x56   :  { %754 = vmatpush.bf16.msrb.mxu2 %v1123_v36 }
  0x58   :  { %599 = vmatpush.bf16.msrb.mxu0 %v1113_v17 }
  0x5a   :  { %755 = vmatpush.bf16.msrb.mxu2 %v1122_v37 }
  0x5c   :  { %600 = vmatpush.bf16.msrb.mxu0 %v1112_v18 }
  0x5e   :  { %756 = vmatpush.bf16.msrb.mxu2 %v1121_v38  ;;  %v1151_v38 = vld [vmem:[%s1577_s11] ss:$0 sm:$0xff] }
  0x60   :  { %601 = vmatpush.bf16.msrb.mxu0 %v1111_v19 }
  0x62   :  { %757 = vmatpush.bf16.msrb.mxu2 %v1120_v39 }
  0x66   :  { %758 = vmatpush.bf16.msrb.mxu2 %v1119_v40 }
  0xc0   :  { %v252_v21 = vpop.f32.mrf.mxu0 }
  0xc1   :  { %v253_v24 = vadd.f32 %v1148_v22, %v252_v21  ;;  %v1133_v21 = vld [vmem:[#allocation14 + $0x30] sm:$0xff] }
  0xc2   :  { %690 = vmatpush.bf16.msrb.mxu1 %v1133_v21 }
  0xc3   :  { %1152 = vtanh.f32 %v253_v24  ;;  %v1130_v24 = vld [vmem:[#allocation14 + $0x18] sm:$0xff] }
  0xc8   :  { %v254_v26 = vpop.f32.mrf.mxu0 }
  0xc9   :  { %v255_v27 = vadd.f32 %v1148_v22, %v254_v26  ;;  %v1153_v31 = vpop.eup %1152  ;;  %v1132_v22 = vld [vmem:[#allocation14 + $0x28] sm:$0xff] }
  0xca   :  { %691 = vmatpush.bf16.msrb.mxu1 %v1132_v22 }
  0xcb   :  { %1154 = vtanh.f32 %v255_v27 }
  0xce   :  { %692 = vmatpush.bf16.msrb.mxu1 %v1131_v23 }
  0xd1   :  { %v1155_v32 = vpop.eup %1154 }
  0xd2   :  { %v259_v33 = vpack.c.bf16 %v1155_v32, %v1153_v31  ;;  %693 = vmatpush.bf16.msrb.mxu1 %v1130_v24  ;;  %v1150_v32 = vld [vmem:[%s1574_s8] ss:$0 sm:$0xff]  ;;  %s1410_s8 = smov [#allocation16]  }
  0xd3   :  { %s831_s11 = sshll.u32 %s1410_s8, 4  ;;  %s832_s11 = int_to_ptr.vmem [resolvable:$true] %s831_s11 }
  0xd4   :  { %336 = vmatmul.bf16.vlgmr.msra.gmra.mxu1 %v259_v33 }
  0xd6   :  { %694 = vmatpush.bf16.msrb.mxu1 %v1129_v28 }
  0xda   :  { %695 = vmatpush.bf16.msrb.mxu1 %v1128_v29 }
  0xde   :  { %696 = vmatpush.bf16.msrb.mxu1 %v1127_v30 }
 0x151   :  { %v337_v41 = vpop.f32.mrf.mxu1 }
 0x152   :  { %v338_v44 = vadd.f32 %v1149_v42, %v337_v41 }
 0x159   :  { %v339_v43 = vpop.f32.mrf.mxu1 }
 0x15a   :  { %v340_v45 = vadd.f32 %v1149_v42, %v339_v43 }
 0x15c   :  { %v342_v46 = vpack.c.bf16 %v340_v45, %v338_v44 }
 0x15e   :  { %415 = vmatmul.bf16.vlgmr.msra.gmra.mxu2 %v342_v46 }
 0x16e   :  { %759 = vmatmul.bf16.vlgmr.msrb.gmra.mxu2 %v259_v33 }
 0x1e1   :  { %v416_v49 = vpop.f32.mrf.mxu2 }
 0x1e2   :  { %v426_v50 = vsel %vm425_vm2, %v416_v49, -1e+30 }
 0x1e3   :  { %428 = vmax.xlane.f32.xlu0 %v426_v50 }
 0x1e9   :  { %v418_v51 = vpop.f32.mrf.mxu2 }
 0x1ea   :  { %v427_v52 = vsel %vm425_vm2, %v418_v51, -1e+30 }
 0x1eb   :  { %430 = vmax.xlane.f32.xlu0 %v427_v52 }
 0x1f1   :  { %v760_v37 = vpop.f32.mrf.mxu2 }
 0x1f9   :  { %v762_v43 = vpop.f32.mrf.mxu2 }
 0x256   :  { %v429_v56 = vpop.xlane.xlu0 %428 }
 0x257   :  { %v432_v57 = vsub.f32 %v426_v50, %v429_v56 }
 0x259   :  { %v434_v58 = vmul.f32 1.442695, %v432_v57 }
 0x25b   :  { %1156 = vpow2.f32 %v434_v58 }
 0x25e   :  { %v431_v59 = vpop.xlane.xlu0 %430 }
 0x25f   :  { %v433_v60 = vsub.f32 %v427_v52, %v431_v59 }
 0x261   :  { %v1157_v61 = vpop.eup %1156  ;;  %v436_v62 = vmul.f32 1.442695, %v433_v60 }
 0x262   :  { %438 = vadd.xlane.f32.xlu1 %v1157_v61 }
 0x263   :  { %1158 = vpow2.f32 %v436_v62 }
 0x269   :  { %v1159_v63 = vpop.eup %1158 }
 0x26a   :  { %440 = vadd.xlane.f32.xlu1 %v1159_v63 }
 0x2d5   :  { %v439_v9 = vpop.xlane.xlu1 %438 }
 0x2d6   :  { %1160 = vrcp.f32 %v439_v9 }
 0x2dc   :  { %v1161_v12 = vpop.eup %1160 }
 0x2dd   :  { %v441_v11 = vpop.xlane.xlu1 %440  ;;  %v1536_v14 = vmul.f32 %v1161_v12, %v1157_v61 }
 0x2de   :  { %1162 = vrcp.f32 %v441_v11 }
 0x2e4   :  { %v1163_v13 = vpop.eup %1162 }
 0x2e5   :  { %v1538_v15 = vmul.f32 %v1163_v13, %v1159_v63 }
 0x2e7   :  { %v446_v16 = vpack.c.bf16 %v1538_v15, %v1536_v14 }
 0x2e9   :  { %519 = vmatmul.bf16.vlgmr.msra.gmra.mxu3 %v446_v16 }
 0x36c   :  { %v520_v25 = vpop.f32.mrf.mxu3 }
 0x374   :  { %v522_v26 = vpop.f32.mrf.mxu3 }
 0x375   :  { %v525_v27 = vpack.c.bf16 %v522_v26, %v520_v25 }
 0x377   :  { %602 = vmatmul.bf16.vlgmr.msrb.gmra.mxu0 %v525_v27 }
 0x3f4   :  { %v603_v31 = vpop.f32.mrf.mxu0 }
 0x3f5   :  { %v604_v34 = vadd.f32 %v1150_v32, %v603_v31 }
 0x3fc   :  { %v605_v33 = vpop.f32.mrf.mxu0 }
 0x3fd   :  { %v606_v35 = vadd.f32 %v1150_v32, %v605_v33 }
 0x3ff   :  { %v608_v36 = vpack.c.bf16 %v606_v35, %v604_v34 }
 0x401   :  { %697 = vmatmul.bf16.vlgmr.msrb.gmra.mxu1 %v608_v36 }
 0x47e   :  { %v698_v39 = vpop.f32.mrf.mxu1 }
 0x47f   :  { %v761_v40 = vadd.f32 %v760_v37, %v698_v39 }
 0x481   :  { %v769_v41 = vadd.f32 %v1151_v38, %v761_v40 }
 0x483   :  { %v774_v42 = vsel %vm773_vm5, %v769_v41, -1e+30 }
 0x484   :  { %776 = vmax.xlane.f32.xlu2 %v774_v42 }
 0x486   :  { %v700_v44 = vpop.f32.mrf.mxu1 }
 0x487   :  { %v763_v45 = vadd.f32 %v762_v43, %v700_v44 }
 0x489   :  { %v770_v46 = vadd.f32 %v1151_v38, %v763_v45 }
 0x48b   :  { %v775_v47 = vsel %vm773_vm5, %v770_v46, -1e+30 }
 0x48c   :  { %778 = vmax.xlane.f32.xlu2 %v775_v47 }
 0x4f7   :  { %v777_v49 = vpop.xlane.xlu2 %776 }
 0x4f8   :  { %v780_v50 = vsub.f32 %v774_v42, %v777_v49 }
 0x4fa   :  { %v782_v51 = vmul.f32 1.442695, %v780_v50 }
 0x4fc   :  { %1164 = vpow2.f32 %v782_v51 }
 0x4ff   :  { %v779_v52 = vpop.xlane.xlu2 %778 }
 0x500   :  { %v781_v53 = vsub.f32 %v775_v47, %v779_v52 }
 0x502   :  { %v1165_v54 = vpop.eup %1164  ;;  %v784_v55 = vmul.f32 1.442695, %v781_v53 }
 0x503   :  { %786 = vadd.xlane.f32.xlu0 %v1165_v54 }
 0x504   :  { %1166 = vpow2.f32 %v784_v55 }
 0x50a   :  { %v1167_v56 = vpop.eup %1166 }
 0x50b   :  { %788 = vadd.xlane.f32.xlu1 %v1167_v56 }
 0x576   :  { %v787_v57 = vpop.xlane.xlu0 %786 }
 0x577   :  { %1168 = vrcp.f32 %v787_v57  ;;  %v801_v62 = vand.u32 2147483648, %v787_v57  ;;  %v799_v0 = vand.u32 2147483647, %v787_v57  ;;  %vm795_vm7 = vweird.f32 %v787_v57 }
 0x579   :  { %v802_v3 = vor.u32 1.1754944e-38, %v801_v62  ;;  %vm800_vm9 = vcmp.eq.f32.partialorder %v799_v0, 8.507059e+37 }
 0x57d   :  { %v1169_v58 = vpop.eup %1168 }
 0x57e   :  { %v791_v59 = vmul.f32 %v1169_v58, %v787_v57  ;;  %v789_v60 = vpop.xlane.xlu1 %788  ;;  %vm796_vm6 = vweird.f32 %v1169_v58 }
 0x57f   :  { %1170 = vrcp.f32 %v789_v60  ;;  %vm797_vm8 = vmor %vm795_vm7, %vm796_vm6  ;;  %v816_v9 = vand.u32 2147483648, %v789_v60  ;;  %v814_v12 = vand.u32 2147483647, %v789_v60  ;;  %vm810_vm12 = vweird.f32 %v789_v60 }
 0x580   :  { %v792_v61 = vsub.f32 1.0, %v791_v59 }
 0x581   :  { %v817_v17 = vor.u32 1.1754944e-38, %v816_v9  ;;  %vm815_vm14 = vcmp.eq.f32.partialorder %v814_v12, 8.507059e+37 }
 0x582   :  { %v793_v63 = vmul.f32 %v1169_v58, %v792_v61 }
 0x584   :  { %v794_v1 = vadd.f32 %v1169_v58, %v793_v63 }
 0x585   :  { %v1171_v2 = vpop.eup %1170 }
 0x586   :  { %v798_v4 = vsel %vm797_vm8, %v1169_v58, %v794_v1  ;;  %v806_v5 = vmul.f32 %v1171_v2, %v789_v60  ;;  %vm811_vm11 = vweird.f32 %v1171_v2 }
 0x587   :  { %v803_v6 = vsel %vm800_vm9, %v802_v3, %v798_v4  ;;  %vm812_vm13 = vmor %vm810_vm12, %vm811_vm11 }
 0x588   :  { %v804_v7 = vmul.f32 %v1165_v54, %v803_v6  ;;  %v807_v8 = vsub.f32 1.0, %v806_v5 }
 0x58a   :  { %v821_v10 = vsel %vm772_vm4, %v804_v7, %v1536_v14  ;;  %v808_v11 = vmul.f32 %v1171_v2, %v807_v8 }
 0x58b   :  { %v823_v13 = vsel %vm820_vm10, %v769_v41, %v821_v10 }
 0x58c   :  { %v809_v16 = vadd.f32 %v1171_v2, %v808_v11  ;;  %825 = vst [vmem:[#allocation16] sm:$0xff] %v823_v13 }
 0x58e   :  { %v813_v18 = vsel %vm812_vm13, %v1171_v2, %v809_v16 }
 0x58f   :  { %v818_v14 = vsel %vm815_vm14, %v817_v17, %v813_v18 }
 0x590   :  { %v819_v19 = vmul.f32 %v1167_v56, %v818_v14 }
 0x592   :  { %v822_v20 = vsel %vm772_vm4, %v819_v19, %v1538_v15 }
 0x593   :  { %v824_v21 = vsel %vm820_vm10, %v770_v46, %v822_v20 }
 0x594   :  { %826 = vst [vmem:[#allocation16 + $0x8] sm:$0xff] %v824_v21 }
 0x595   :  { %839 = dma.vmem_to_hbm [thread:$0]  %s832_s11, 256, %s834_s24, [#allocation4], %s1411_s0, %s1411_s0, %s1412_s25  }
 0x596   :  { %1398 = dma.done.wait [#allocation4], 256  }
 0x597   :  { %1399 = vsyncadd [#allocation4], 4294967040 }
 0x598   :  { %844 = vsyncpa [#allocation3], 1 }
 0x599   :  { %845 = vsyncpa [#allocation6], 1 }
 0x59a   :  { %846 = vsyncpa [#allocation9], 1 }
 0x59b   :  { %847 = vsyncpa [#allocation12], 1 }
 0x59c   :  { %848 = vsyncpa [#allocation15], 1 }
 0x59d   :  { %849 = vsyncpa [#allocation4], 1 }

</bundles_post_ra>
